<compile_context>
chip_gen: v6e
topology: v6e:2x2x1
jax: 0.10.0
libtpu: 0.0.40
codegen_flags: <defaults>
</compile_context>

<pallas_src>
import functools
import numpy as np
import jax
import jax.numpy as jnp
from jax.experimental import pallas as pl
from jax.experimental.pallas import tpu as pltpu


GATE_W = 128  # lanes per gate group (i, f, g, o): [fwd H | bwd H | zero pad] = one full vreg


# ----------------------------- Pallas kernel ---------------------------------
def textrcnn_kernel(emb_ref,    # (S*Bp, 2E) f32: per step row-block [x_fwd(t=s) | x_bwd(t=S-1-s)]
                    wslab_ref,  # (2E + 128 + 8, 4*128): [wi ; wh ; bias ; pad] gate-group layout
                    fslab_ref,  # (2E + 128 + 8, Cp):    [fcw_x ; fcw_h ; fcb ; pad]
                    out_ref,    # (Bp, Cp)
                    *, S, Bp, E):
    G = GATE_W
    E2 = 2 * E
    Gh = G                      # padded state width: lanes [0:H)=fwd, [H:2H)=bwd, rest exactly 0

    emb = emb_ref[...]                                        # (S*Bp, 2E)

    # Static, tile-aligned views into the packed weight slab (one DMA for all constants).
    wi = wslab_ref[0:E2, :]                                   # (2E, 4G)
    wh = wslab_ref[E2:E2 + Gh, :]                             # (G, 4G)  rows >=2H are zero
    b = wslab_ref[E2 + Gh:E2 + Gh + 1, :]                     # (1, 4G)  zero in pad lanes

    # One batched input projection for BOTH directions + bias (off the critical path).
    xproj = jnp.dot(emb, wi, preferred_element_type=jnp.float32) + b   # (S*Bp, 4G)

    h = jnp.zeros((Bp, Gh), jnp.float32)
    c = jnp.zeros((Bp, Gh), jnp.float32)
    m = jnp.zeros((Bp, Gh), jnp.float32)      # running max_t relu(h_t) (init 0 == relu)

    # Fused fwd+bwd recurrence, fully unrolled (S static).  All gate slices are
    # full-vreg (128-lane) slices; pad lanes stay exactly 0 (zero Wh/Wi/bias pad cols
    # => gates_pad=0 => f=i=o=0.5, g=0 => c_pad=h_pad=0 forever).
    for s in range(S):
        xp = xproj[s * Bp:(s + 1) * Bp, :]                    # sublane-aligned (Bp, 4G)
        gates = jnp.dot(h, wh, preferred_element_type=jnp.float32) + xp
        gi = jax.nn.sigmoid(gates[:, 0 * G:1 * G])
        gf = jax.nn.sigmoid(gates[:, 1 * G:2 * G])
        gg = jnp.tanh(gates[:, 2 * G:3 * G])                  # tanh only on the g vreg
        go = jax.nn.sigmoid(gates[:, 3 * G:4 * G])
        c = gf * c + gi * gg
        h = go * jnp.tanh(c)
        m = jnp.maximum(m, h)

    # relu + max-over-time of the embedding: full-width row-block maxes (no sub-vreg
    # lane slices); off the recurrence critical path.  Both 2E halves end up equal;
    # the duplicate is killed by zero rows in the FC slab (no lane extract needed).
    px = emb[0:Bp, :]
    for s in range(1, S):
        px = jnp.maximum(px, emb[s * Bp:(s + 1) * Bp, :])
    pooled_x = jnp.maximum(px, 0.0)                           # (Bp, 2E)

    fcwx = fslab_ref[0:E2, :]                                 # rows E:2E are zero
    fcwh = fslab_ref[E2:E2 + Gh, :]                           # rows 2H:G are zero
    fcb = fslab_ref[E2 + Gh:E2 + Gh + 1, :]

    # FC distributed over the (eliminated) concat.
    out_ref[...] = (jnp.dot(pooled_x, fcwx, preferred_element_type=jnp.float32)
                    + jnp.dot(m, fcwh, preferred_element_type=jnp.float32)
                    + fcb)


def textrcnn_forward(emb2d, wslab, fslab, *, S, Bp, E, Cp):
    vmem = pl.BlockSpec(memory_space=pltpu.MemorySpace.VMEM)
    G = GATE_W
    flops = int(2 * (S * Bp * 2 * E * 4 * G      # input projection
                     + S * Bp * G * 4 * G        # recurrence matmuls
                     + Bp * 2 * E * Cp + Bp * G * Cp))   # fc
    transcendentals = int(S * Bp * 5 * G)
    bytes_accessed = int(4 * (emb2d.size + wslab.size + fslab.size + Bp * Cp))
    return pl.pallas_call(
        functools.partial(textrcnn_kernel, S=S, Bp=Bp, E=E),
        out_shape=jax.ShapeDtypeStruct((Bp, Cp), jnp.float32),
        in_specs=[vmem, vmem, vmem],
        out_specs=vmem,
        cost_estimate=pl.CostEstimate(flops=flops, transcendentals=transcendentals,
                                      bytes_accessed=bytes_accessed),
    )(emb2d, wslab, fslab)


# ----------------------------- parameter packing ------------------------------
def build_packed_weights(wif, whf, bf, wib, whb, bb, fcw, fcb, E, H, Cp):
    """Pack LSTM + FC weights into two slabs.

    Gate-group layout (G=128 lanes per gate, PyTorch gate order i,f,g,o):
      cols [g*G + 0 : g*G + H)   -> forward-direction gate g
      cols [g*G + H : g*G + 2H)  -> backward-direction gate g
      cols [g*G + 2H: (g+1)*G)   -> zero padding (keeps h/c pad lanes at exactly 0)
    Slab rows: [0:2E) = Wi, [2E:2E+G) = Wh (rows >= 2H zero), row 2E+G = bias.
    """
    G = GATE_W
    assert 2 * H <= G
    E2, Gh = 2 * E, G
    wi = np.zeros((E2, 4 * G), np.float32)
    wh = np.zeros((Gh, 4 * G), np.float32)
    b = np.zeros((1, 4 * G), np.float32)
    for g in range(4):
        src = slice(g * H, (g + 1) * H)
        cf = slice(g * G, g * G + H)                 # forward lanes of gate g
        cb = slice(g * G + H, g * G + 2 * H)         # backward lanes of gate g
        wi[:E, cf] = wif[:, src]
        wi[E:, cb] = wib[:, src]
        wh[:H, cf] = whf[:, src]
        wh[H:2 * H, cb] = whb[:, src]
        b[:, cf] = bf[:, src]
        b[:, cb] = bb[:, src]
    wslab = np.zeros((E2 + Gh + 8, 4 * G), np.float32)
    wslab[0:E2] = wi
    wslab[E2:E2 + Gh] = wh
    wslab[E2 + Gh] = b

    C = fcw.shape[1]
    fslab = np.zeros((E2 + Gh + 8, Cp), np.float32)
    fslab[0:E, :C] = fcw[:E]                 # pooled-embedding rows (E:2E stay zero: the
                                             # bwd half of pooled_x duplicates the fwd half)
    fslab[E2:E2 + 2 * H, :C] = fcw[E:]       # pooled-h rows: [h_fwd | h_bwd]
    fslab[E2 + Gh, :C] = fcb[0]
    return jnp.asarray(wslab), jnp.asarray(fslab)


# ----------------------------- pure-JAX reference ----------------------------
def reference(ids, emb_table, wif, whf, bf, wib, whb, bb, fcw, fcb):
    embed = emb_table[ids]                                # (B, S, E)
    B, S, E = embed.shape
    H = whf.shape[0]

    def cell(x_t, h, c, wi, wh, b):
        g = x_t @ wi + h @ wh + b
        i = jax.nn.sigmoid(g[:, :H]); f = jax.nn.sigmoid(g[:, H:2 * H])
        gg = jnp.tanh(g[:, 2 * H:3 * H]); o = jax.nn.sigmoid(g[:, 3 * H:])
        c = f * c + i * gg
        return o * jnp.tanh(c), c

    h = c = jnp.zeros((B, H), jnp.float32)
    hf = []
    for t in range(S):
        h, c = cell(embed[:, t], h, c, wif, whf, bf)
        hf.append(h)
    h = c = jnp.zeros((B, H), jnp.float32)
    hb = [None] * S
    for t in range(S - 1, -1, -1):
        h, c = cell(embed[:, t], h, c, wib, whb, bb)
        hb[t] = h
    seq = jnp.stack(
        [jnp.concatenate([embed[:, t], hf[t], hb[t]], axis=-1) for t in range(S)],
        axis=1)                                           # (B, S, E+2H)
    pooled = jax.nn.relu(seq).max(axis=1)                 # (B, E+2H)
    return pooled @ fcw + fcb


# ----------------------------------- main -------------------------------------
if __name__ == "__main__":
    # config
    n_vocab, E, H, S, C, B = 50, 32, 32, 8, 4, 2          # num_layers = 1
    C_pad = 128                                           # lane-dense output
    B_pad = max(8, -(-B // 8) * 8)                        # raise real B for throughput; kernel is Bp-generic

    key = jax.random.PRNGKey(0)
    ks = jax.random.split(key, 12)

    # deterministic parameter init (PyTorch gate order i, f, g, o; weights stored transposed)
    emb_table = 0.1 * jax.random.normal(ks[0], (n_vocab, E), jnp.float32)
    emb_table = emb_table.at[n_vocab - 1].set(0.0)        # padding_idx row = 0

    wif = 0.1 * jax.random.normal(ks[1], (E, 4 * H), jnp.float32)
    whf = 0.1 * jax.random.normal(ks[2], (H, 4 * H), jnp.float32)
    bf = 0.1 * jax.random.normal(ks[3], (1, 4 * H), jnp.float32)   # b_ih + b_hh folded
    wib = 0.1 * jax.random.normal(ks[4], (E, 4 * H), jnp.float32)
    whb = 0.1 * jax.random.normal(ks[5], (H, 4 * H), jnp.float32)
    bb = 0.1 * jax.random.normal(ks[6], (1, 4 * H), jnp.float32)

    fcw = 0.1 * jax.random.normal(ks[7], (E + 2 * H, C), jnp.float32)
    fcb = 0.1 * jax.random.normal(ks[8], (1, C), jnp.float32)

    # module input is a tuple (token_ids, seq_len); seq_len is ignored by forward
    ids = jax.random.randint(ks[9], (B, S), 0, n_vocab - 1, dtype=jnp.int32)
    seq_len = jnp.full((B,), S, jnp.int32)
    x = (ids, seq_len)

    # --- glue: embedding gather, batch padding, time-major + reversed copy ---------
    token_ids, _ = x
    embed = jnp.take(emb_table, token_ids, axis=0)        # (B, S, E)
    embed_p = jnp.pad(embed, ((0, B_pad - B), (0, 0), (0, 0)))   # (Bp, S, E)
    emb_tm = jnp.transpose(embed_p, (1, 0, 2))            # (S, Bp, E)
    emb_cat = jnp.concatenate([emb_tm, emb_tm[::-1]], axis=-1)   # (S, Bp, 2E)
    emb2d = emb_cat.reshape(S * B_pad, 2 * E)             # (S*Bp, 2E)

    # --- pack weights into two slabs (vreg-aligned gate groups, zero-padded) --------
    wslab, fslab = build_packed_weights(
        np.asarray(wif), np.asarray(whf), np.asarray(bf),
        np.asarray(wib), np.asarray(whb), np.asarray(bb),
        np.asarray(fcw), np.asarray(fcb), E, H, C_pad)

    out_pad = textrcnn_forward(emb2d, wslab, fslab, S=S, Bp=B_pad, E=E, Cp=C_pad)
    out = jax.block_until_ready(out_pad[:B, :C])          # strip batch/class padding

    ref = jax.block_until_ready(
        reference(token_ids, emb_table, wif, whf, bf, wib, whb, bb, fcw, fcb))

    assert out.shape == (B, C), out.shape
    np.testing.assert_allclose(np.asarray(out), np.asarray(ref), rtol=1e-4, atol=1e-4)
    print("KERNEL_OK")
</pallas_src>

<mosaic_0001>
module attributes {stable_mosaic.version = 11 : i64} {
  func.func @textrcnn_kernel(%arg0: memref<64x64xf32, #tpu.memory_space<vmem>>, %arg1: memref<200x512xf32, #tpu.memory_space<vmem>>, %arg2: memref<200x128xf32, #tpu.memory_space<vmem>>, %arg3: memref<8x128xf32, #tpu.memory_space<vmem>>) attributes {dimension_semantics = [], scalar_prefetch = 0 : i64, scratch_operands = 0 : i64, tpu.core_type = #tpu.core_type<tc>} {
    %c0 = arith.constant 0 : index
    %c0_0 = arith.constant 0 : index
    %0 = vector.load %arg0[%c0, %c0_0] : memref<64x64xf32, #tpu.memory_space<vmem>>, vector<64x64xf32>
    %c0_1 = arith.constant 0 : index
    %c0_2 = arith.constant 0 : index
    %1 = vector.load %arg1[%c0_1, %c0_2] : memref<200x512xf32, #tpu.memory_space<vmem>>, vector<64x512xf32>
    %c64 = arith.constant 64 : index
    %c0_3 = arith.constant 0 : index
    %2 = vector.load %arg1[%c64, %c0_3] : memref<200x512xf32, #tpu.memory_space<vmem>>, vector<128x512xf32>
    %c192 = arith.constant 192 : index
    %c0_4 = arith.constant 0 : index
    %3 = vector.load %arg1[%c192, %c0_4] : memref<200x512xf32, #tpu.memory_space<vmem>>, vector<1x512xf32>
    %cst = arith.constant dense<0.000000e+00> : vector<64x512xf32>
    %4 = tpu.matmul %0, %1, %cst {dimension_numbers = #tpu.dot_dimension_numbers<[1], [0], [0], [1], [0, 0, 1, 1], [], []>} : vector<64x64xf32>, vector<64x512xf32>, vector<64x512xf32> -> vector<64x512xf32>
    %5 = vector.broadcast %3 : vector<1x512xf32> to vector<64x512xf32>
    %6 = arith.addf %4, %5 : vector<64x512xf32>
    %cst_5 = arith.constant 0.000000e+00 : f32
    %7 = vector.broadcast %cst_5 : f32 to vector<8x128xf32>
    %cst_6 = arith.constant 0.000000e+00 : f32
    %8 = vector.broadcast %cst_6 : f32 to vector<8x128xf32>
    %cst_7 = arith.constant 0.000000e+00 : f32
    %9 = vector.broadcast %cst_7 : f32 to vector<8x128xf32>
    %10 = vector.extract_strided_slice %6 {offsets = [0, 0], sizes = [8, 512], strides = [1, 1]} : vector<64x512xf32> to vector<8x512xf32>
    %cst_8 = arith.constant dense<0.000000e+00> : vector<8x512xf32>
    %11 = tpu.matmul %7, %2, %cst_8 {dimension_numbers = #tpu.dot_dimension_numbers<[1], [0], [0], [1], [0, 0, 1, 1], [], []>} : vector<8x128xf32>, vector<128x512xf32>, vector<8x512xf32> -> vector<8x512xf32>
    %12 = arith.addf %11, %10 : vector<8x512xf32>
    %13 = vector.extract_strided_slice %12 {offsets = [0, 0], sizes = [8, 128], strides = [1, 1]} : vector<8x512xf32> to vector<8x128xf32>
    %14 = arith.negf %13 : vector<8x128xf32>
    %15 = math.exp %14 : vector<8x128xf32>
    %cst_9 = arith.constant 1.000000e+00 : f32
    %16 = vector.broadcast %cst_9 : f32 to vector<8x128xf32>
    %17 = arith.addf %16, %15 : vector<8x128xf32>
    %18 = arith.divf %16, %17 : vector<8x128xf32>
    %19 = vector.extract_strided_slice %12 {offsets = [0, 128], sizes = [8, 128], strides = [1, 1]} : vector<8x512xf32> to vector<8x128xf32>
    %20 = arith.negf %19 : vector<8x128xf32>
    %21 = math.exp %20 : vector<8x128xf32>
    %cst_10 = arith.constant 1.000000e+00 : f32
    %22 = vector.broadcast %cst_10 : f32 to vector<8x128xf32>
    %23 = arith.addf %22, %21 : vector<8x128xf32>
    %24 = arith.divf %22, %23 : vector<8x128xf32>
    %25 = vector.extract_strided_slice %12 {offsets = [0, 256], sizes = [8, 128], strides = [1, 1]} : vector<8x512xf32> to vector<8x128xf32>
    %26 = math.tanh %25 : vector<8x128xf32>
    %27 = vector.extract_strided_slice %12 {offsets = [0, 384], sizes = [8, 128], strides = [1, 1]} : vector<8x512xf32> to vector<8x128xf32>
    %28 = arith.negf %27 : vector<8x128xf32>
    %29 = math.exp %28 : vector<8x128xf32>
    %cst_11 = arith.constant 1.000000e+00 : f32
    %30 = vector.broadcast %cst_11 : f32 to vector<8x128xf32>
    %31 = arith.addf %30, %29 : vector<8x128xf32>
    %32 = arith.divf %30, %31 : vector<8x128xf32>
    %33 = arith.mulf %24, %8 : vector<8x128xf32>
    %34 = arith.mulf %18, %26 : vector<8x128xf32>
    %35 = arith.addf %33, %34 : vector<8x128xf32>
    %36 = math.tanh %35 : vector<8x128xf32>
    %37 = arith.mulf %32, %36 : vector<8x128xf32>
    %38 = arith.maximumf %9, %37 : vector<8x128xf32>
    %39 = vector.extract_strided_slice %6 {offsets = [8, 0], sizes = [8, 512], strides = [1, 1]} : vector<64x512xf32> to vector<8x512xf32>
    %cst_12 = arith.constant dense<0.000000e+00> : vector<8x512xf32>
    %40 = tpu.matmul %37, %2, %cst_12 {dimension_numbers = #tpu.dot_dimension_numbers<[1], [0], [0], [1], [0, 0, 1, 1], [], []>} : vector<8x128xf32>, vector<128x512xf32>, vector<8x512xf32> -> vector<8x512xf32>
    %41 = arith.addf %40, %39 : vector<8x512xf32>
    %42 = vector.extract_strided_slice %41 {offsets = [0, 0], sizes = [8, 128], strides = [1, 1]} : vector<8x512xf32> to vector<8x128xf32>
    %43 = arith.negf %42 : vector<8x128xf32>
    %44 = math.exp %43 : vector<8x128xf32>
    %cst_13 = arith.constant 1.000000e+00 : f32
    %45 = vector.broadcast %cst_13 : f32 to vector<8x128xf32>
    %46 = arith.addf %45, %44 : vector<8x128xf32>
    %47 = arith.divf %45, %46 : vector<8x128xf32>
    %48 = vector.extract_strided_slice %41 {offsets = [0, 128], sizes = [8, 128], strides = [1, 1]} : vector<8x512xf32> to vector<8x128xf32>
    %49 = arith.negf %48 : vector<8x128xf32>
    %50 = math.exp %49 : vector<8x128xf32>
    %cst_14 = arith.constant 1.000000e+00 : f32
    %51 = vector.broadcast %cst_14 : f32 to vector<8x128xf32>
    %52 = arith.addf %51, %50 : vector<8x128xf32>
    %53 = arith.divf %51, %52 : vector<8x128xf32>
    %54 = vector.extract_strided_slice %41 {offsets = [0, 256], sizes = [8, 128], strides = [1, 1]} : vector<8x512xf32> to vector<8x128xf32>
    %55 = math.tanh %54 : vector<8x128xf32>
    %56 = vector.extract_strided_slice %41 {offsets = [0, 384], sizes = [8, 128], strides = [1, 1]} : vector<8x512xf32> to vector<8x128xf32>
    %57 = arith.negf %56 : vector<8x128xf32>
    %58 = math.exp %57 : vector<8x128xf32>
    %cst_15 = arith.constant 1.000000e+00 : f32
    %59 = vector.broadcast %cst_15 : f32 to vector<8x128xf32>
    %60 = arith.addf %59, %58 : vector<8x128xf32>
    %61 = arith.divf %59, %60 : vector<8x128xf32>
    %62 = arith.mulf %53, %35 : vector<8x128xf32>
    %63 = arith.mulf %47, %55 : vector<8x128xf32>
    %64 = arith.addf %62, %63 : vector<8x128xf32>
    %65 = math.tanh %64 : vector<8x128xf32>
    %66 = arith.mulf %61, %65 : vector<8x128xf32>
    %67 = arith.maximumf %38, %66 : vector<8x128xf32>
    %68 = vector.extract_strided_slice %6 {offsets = [16, 0], sizes = [8, 512], strides = [1, 1]} : vector<64x512xf32> to vector<8x512xf32>
    %cst_16 = arith.constant dense<0.000000e+00> : vector<8x512xf32>
    %69 = tpu.matmul %66, %2, %cst_16 {dimension_numbers = #tpu.dot_dimension_numbers<[1], [0], [0], [1], [0, 0, 1, 1], [], []>} : vector<8x128xf32>, vector<128x512xf32>, vector<8x512xf32> -> vector<8x512xf32>
    %70 = arith.addf %69, %68 : vector<8x512xf32>
    %71 = vector.extract_strided_slice %70 {offsets = [0, 0], sizes = [8, 128], strides = [1, 1]} : vector<8x512xf32> to vector<8x128xf32>
    %72 = arith.negf %71 : vector<8x128xf32>
    %73 = math.exp %72 : vector<8x128xf32>
    %cst_17 = arith.constant 1.000000e+00 : f32
    %74 = vector.broadcast %cst_17 : f32 to vector<8x128xf32>
    %75 = arith.addf %74, %73 : vector<8x128xf32>
    %76 = arith.divf %74, %75 : vector<8x128xf32>
    %77 = vector.extract_strided_slice %70 {offsets = [0, 128], sizes = [8, 128], strides = [1, 1]} : vector<8x512xf32> to vector<8x128xf32>
    %78 = arith.negf %77 : vector<8x128xf32>
    %79 = math.exp %78 : vector<8x128xf32>
    %cst_18 = arith.constant 1.000000e+00 : f32
    %80 = vector.broadcast %cst_18 : f32 to vector<8x128xf32>
    %81 = arith.addf %80, %79 : vector<8x128xf32>
    %82 = arith.divf %80, %81 : vector<8x128xf32>
    %83 = vector.extract_strided_slice %70 {offsets = [0, 256], sizes = [8, 128], strides = [1, 1]} : vector<8x512xf32> to vector<8x128xf32>
    %84 = math.tanh %83 : vector<8x128xf32>
    %85 = vector.extract_strided_slice %70 {offsets = [0, 384], sizes = [8, 128], strides = [1, 1]} : vector<8x512xf32> to vector<8x128xf32>
    %86 = arith.negf %85 : vector<8x128xf32>
    %87 = math.exp %86 : vector<8x128xf32>
    %cst_19 = arith.constant 1.000000e+00 : f32
    %88 = vector.broadcast %cst_19 : f32 to vector<8x128xf32>
    %89 = arith.addf %88, %87 : vector<8x128xf32>
    %90 = arith.divf %88, %89 : vector<8x128xf32>
    %91 = arith.mulf %82, %64 : vector<8x128xf32>
    %92 = arith.mulf %76, %84 : vector<8x128xf32>
    %93 = arith.addf %91, %92 : vector<8x128xf32>
    %94 = math.tanh %93 : vector<8x128xf32>
    %95 = arith.mulf %90, %94 : vector<8x128xf32>
    %96 = arith.maximumf %67, %95 : vector<8x128xf32>
    %97 = vector.extract_strided_slice %6 {offsets = [24, 0], sizes = [8, 512], strides = [1, 1]} : vector<64x512xf32> to vector<8x512xf32>
    %cst_20 = arith.constant dense<0.000000e+00> : vector<8x512xf32>
    %98 = tpu.matmul %95, %2, %cst_20 {dimension_numbers = #tpu.dot_dimension_numbers<[1], [0], [0], [1], [0, 0, 1, 1], [], []>} : vector<8x128xf32>, vector<128x512xf32>, vector<8x512xf32> -> vector<8x512xf32>
    %99 = arith.addf %98, %97 : vector<8x512xf32>
    %100 = vector.extract_strided_slice %99 {offsets = [0, 0], sizes = [8, 128], strides = [1, 1]} : vector<8x512xf32> to vector<8x128xf32>
    %101 = arith.negf %100 : vector<8x128xf32>
    %102 = math.exp %101 : vector<8x128xf32>
    %cst_21 = arith.constant 1.000000e+00 : f32
    %103 = vector.broadcast %cst_21 : f32 to vector<8x128xf32>
    %104 = arith.addf %103, %102 : vector<8x128xf32>
    %105 = arith.divf %103, %104 : vector<8x128xf32>
    %106 = vector.extract_strided_slice %99 {offsets = [0, 128], sizes = [8, 128], strides = [1, 1]} : vector<8x512xf32> to vector<8x128xf32>
    %107 = arith.negf %106 : vector<8x128xf32>
    %108 = math.exp %107 : vector<8x128xf32>
    %cst_22 = arith.constant 1.000000e+00 : f32
    %109 = vector.broadcast %cst_22 : f32 to vector<8x128xf32>
    %110 = arith.addf %109, %108 : vector<8x128xf32>
    %111 = arith.divf %109, %110 : vector<8x128xf32>
    %112 = vector.extract_strided_slice %99 {offsets = [0, 256], sizes = [8, 128], strides = [1, 1]} : vector<8x512xf32> to vector<8x128xf32>
    %113 = math.tanh %112 : vector<8x128xf32>
    %114 = vector.extract_strided_slice %99 {offsets = [0, 384], sizes = [8, 128], strides = [1, 1]} : vector<8x512xf32> to vector<8x128xf32>
    %115 = arith.negf %114 : vector<8x128xf32>
    %116 = math.exp %115 : vector<8x128xf32>
    %cst_23 = arith.constant 1.000000e+00 : f32
    %117 = vector.broadcast %cst_23 : f32 to vector<8x128xf32>
    %118 = arith.addf %117, %116 : vector<8x128xf32>
    %119 = arith.divf %117, %118 : vector<8x128xf32>
    %120 = arith.mulf %111, %93 : vector<8x128xf32>
    %121 = arith.mulf %105, %113 : vector<8x128xf32>
    %122 = arith.addf %120, %121 : vector<8x128xf32>
    %123 = math.tanh %122 : vector<8x128xf32>
    %124 = arith.mulf %119, %123 : vector<8x128xf32>
    %125 = arith.maximumf %96, %124 : vector<8x128xf32>
    %126 = vector.extract_strided_slice %6 {offsets = [32, 0], sizes = [8, 512], strides = [1, 1]} : vector<64x512xf32> to vector<8x512xf32>
    %cst_24 = arith.constant dense<0.000000e+00> : vector<8x512xf32>
    %127 = tpu.matmul %124, %2, %cst_24 {dimension_numbers = #tpu.dot_dimension_numbers<[1], [0], [0], [1], [0, 0, 1, 1], [], []>} : vector<8x128xf32>, vector<128x512xf32>, vector<8x512xf32> -> vector<8x512xf32>
    %128 = arith.addf %127, %126 : vector<8x512xf32>
    %129 = vector.extract_strided_slice %128 {offsets = [0, 0], sizes = [8, 128], strides = [1, 1]} : vector<8x512xf32> to vector<8x128xf32>
    %130 = arith.negf %129 : vector<8x128xf32>
    %131 = math.exp %130 : vector<8x128xf32>
    %cst_25 = arith.constant 1.000000e+00 : f32
    %132 = vector.broadcast %cst_25 : f32 to vector<8x128xf32>
    %133 = arith.addf %132, %131 : vector<8x128xf32>
    %134 = arith.divf %132, %133 : vector<8x128xf32>
    %135 = vector.extract_strided_slice %128 {offsets = [0, 128], sizes = [8, 128], strides = [1, 1]} : vector<8x512xf32> to vector<8x128xf32>
    %136 = arith.negf %135 : vector<8x128xf32>
    %137 = math.exp %136 : vector<8x128xf32>
    %cst_26 = arith.constant 1.000000e+00 : f32
    %138 = vector.broadcast %cst_26 : f32 to vector<8x128xf32>
    %139 = arith.addf %138, %137 : vector<8x128xf32>
    %140 = arith.divf %138, %139 : vector<8x128xf32>
    %141 = vector.extract_strided_slice %128 {offsets = [0, 256], sizes = [8, 128], strides = [1, 1]} : vector<8x512xf32> to vector<8x128xf32>
    %142 = math.tanh %141 : vector<8x128xf32>
    %143 = vector.extract_strided_slice %128 {offsets = [0, 384], sizes = [8, 128], strides = [1, 1]} : vector<8x512xf32> to vector<8x128xf32>
    %144 = arith.negf %143 : vector<8x128xf32>
    %145 = math.exp %144 : vector<8x128xf32>
    %cst_27 = arith.constant 1.000000e+00 : f32
    %146 = vector.broadcast %cst_27 : f32 to vector<8x128xf32>
    %147 = arith.addf %146, %145 : vector<8x128xf32>
    %148 = arith.divf %146, %147 : vector<8x128xf32>
    %149 = arith.mulf %140, %122 : vector<8x128xf32>
    %150 = arith.mulf %134, %142 : vector<8x128xf32>
    %151 = arith.addf %149, %150 : vector<8x128xf32>
    %152 = math.tanh %151 : vector<8x128xf32>
    %153 = arith.mulf %148, %152 : vector<8x128xf32>
    %154 = arith.maximumf %125, %153 : vector<8x128xf32>
    %155 = vector.extract_strided_slice %6 {offsets = [40, 0], sizes = [8, 512], strides = [1, 1]} : vector<64x512xf32> to vector<8x512xf32>
    %cst_28 = arith.constant dense<0.000000e+00> : vector<8x512xf32>
    %156 = tpu.matmul %153, %2, %cst_28 {dimension_numbers = #tpu.dot_dimension_numbers<[1], [0], [0], [1], [0, 0, 1, 1], [], []>} : vector<8x128xf32>, vector<128x512xf32>, vector<8x512xf32> -> vector<8x512xf32>
    %157 = arith.addf %156, %155 : vector<8x512xf32>
    %158 = vector.extract_strided_slice %157 {offsets = [0, 0], sizes = [8, 128], strides = [1, 1]} : vector<8x512xf32> to vector<8x128xf32>
    %159 = arith.negf %158 : vector<8x128xf32>
    %160 = math.exp %159 : vector<8x128xf32>
    %cst_29 = arith.constant 1.000000e+00 : f32
    %161 = vector.broadcast %cst_29 : f32 to vector<8x128xf32>
    %162 = arith.addf %161, %160 : vector<8x128xf32>
    %163 = arith.divf %161, %162 : vector<8x128xf32>
    %164 = vector.extract_strided_slice %157 {offsets = [0, 128], sizes = [8, 128], strides = [1, 1]} : vector<8x512xf32> to vector<8x128xf32>
    %165 = arith.negf %164 : vector<8x128xf32>
    %166 = math.exp %165 : vector<8x128xf32>
    %cst_30 = arith.constant 1.000000e+00 : f32
    %167 = vector.broadcast %cst_30 : f32 to vector<8x128xf32>
    %168 = arith.addf %167, %166 : vector<8x128xf32>
    %169 = arith.divf %167, %168 : vector<8x128xf32>
    %170 = vector.extract_strided_slice %157 {offsets = [0, 256], sizes = [8, 128], strides = [1, 1]} : vector<8x512xf32> to vector<8x128xf32>
    %171 = math.tanh %170 : vector<8x128xf32>
    %172 = vector.extract_strided_slice %157 {offsets = [0, 384], sizes = [8, 128], strides = [1, 1]} : vector<8x512xf32> to vector<8x128xf32>
    %173 = arith.negf %172 : vector<8x128xf32>
    %174 = math.exp %173 : vector<8x128xf32>
    %cst_31 = arith.constant 1.000000e+00 : f32
    %175 = vector.broadcast %cst_31 : f32 to vector<8x128xf32>
    %176 = arith.addf %175, %174 : vector<8x128xf32>
    %177 = arith.divf %175, %176 : vector<8x128xf32>
    %178 = arith.mulf %169, %151 : vector<8x128xf32>
    %179 = arith.mulf %163, %171 : vector<8x128xf32>
    %180 = arith.addf %178, %179 : vector<8x128xf32>
    %181 = math.tanh %180 : vector<8x128xf32>
    %182 = arith.mulf %177, %181 : vector<8x128xf32>
    %183 = arith.maximumf %154, %182 : vector<8x128xf32>
    %184 = vector.extract_strided_slice %6 {offsets = [48, 0], sizes = [8, 512], strides = [1, 1]} : vector<64x512xf32> to vector<8x512xf32>
    %cst_32 = arith.constant dense<0.000000e+00> : vector<8x512xf32>
    %185 = tpu.matmul %182, %2, %cst_32 {dimension_numbers = #tpu.dot_dimension_numbers<[1], [0], [0], [1], [0, 0, 1, 1], [], []>} : vector<8x128xf32>, vector<128x512xf32>, vector<8x512xf32> -> vector<8x512xf32>
    %186 = arith.addf %185, %184 : vector<8x512xf32>
    %187 = vector.extract_strided_slice %186 {offsets = [0, 0], sizes = [8, 128], strides = [1, 1]} : vector<8x512xf32> to vector<8x128xf32>
    %188 = arith.negf %187 : vector<8x128xf32>
    %189 = math.exp %188 : vector<8x128xf32>
    %cst_33 = arith.constant 1.000000e+00 : f32
    %190 = vector.broadcast %cst_33 : f32 to vector<8x128xf32>
    %191 = arith.addf %190, %189 : vector<8x128xf32>
    %192 = arith.divf %190, %191 : vector<8x128xf32>
    %193 = vector.extract_strided_slice %186 {offsets = [0, 128], sizes = [8, 128], strides = [1, 1]} : vector<8x512xf32> to vector<8x128xf32>
    %194 = arith.negf %193 : vector<8x128xf32>
    %195 = math.exp %194 : vector<8x128xf32>
    %cst_34 = arith.constant 1.000000e+00 : f32
    %196 = vector.broadcast %cst_34 : f32 to vector<8x128xf32>
    %197 = arith.addf %196, %195 : vector<8x128xf32>
    %198 = arith.divf %196, %197 : vector<8x128xf32>
    %199 = vector.extract_strided_slice %186 {offsets = [0, 256], sizes = [8, 128], strides = [1, 1]} : vector<8x512xf32> to vector<8x128xf32>
    %200 = math.tanh %199 : vector<8x128xf32>
    %201 = vector.extract_strided_slice %186 {offsets = [0, 384], sizes = [8, 128], strides = [1, 1]} : vector<8x512xf32> to vector<8x128xf32>
    %202 = arith.negf %201 : vector<8x128xf32>
    %203 = math.exp %202 : vector<8x128xf32>
    %cst_35 = arith.constant 1.000000e+00 : f32
    %204 = vector.broadcast %cst_35 : f32 to vector<8x128xf32>
    %205 = arith.addf %204, %203 : vector<8x128xf32>
    %206 = arith.divf %204, %205 : vector<8x128xf32>
    %207 = arith.mulf %198, %180 : vector<8x128xf32>
    %208 = arith.mulf %192, %200 : vector<8x128xf32>
    %209 = arith.addf %207, %208 : vector<8x128xf32>
    %210 = math.tanh %209 : vector<8x128xf32>
    %211 = arith.mulf %206, %210 : vector<8x128xf32>
    %212 = arith.maximumf %183, %211 : vector<8x128xf32>
    %213 = vector.extract_strided_slice %6 {offsets = [56, 0], sizes = [8, 512], strides = [1, 1]} : vector<64x512xf32> to vector<8x512xf32>
    %cst_36 = arith.constant dense<0.000000e+00> : vector<8x512xf32>
    %214 = tpu.matmul %211, %2, %cst_36 {dimension_numbers = #tpu.dot_dimension_numbers<[1], [0], [0], [1], [0, 0, 1, 1], [], []>} : vector<8x128xf32>, vector<128x512xf32>, vector<8x512xf32> -> vector<8x512xf32>
    %215 = arith.addf %214, %213 : vector<8x512xf32>
    %216 = vector.extract_strided_slice %215 {offsets = [0, 0], sizes = [8, 128], strides = [1, 1]} : vector<8x512xf32> to vector<8x128xf32>
    %217 = arith.negf %216 : vector<8x128xf32>
    %218 = math.exp %217 : vector<8x128xf32>
    %cst_37 = arith.constant 1.000000e+00 : f32
    %219 = vector.broadcast %cst_37 : f32 to vector<8x128xf32>
    %220 = arith.addf %219, %218 : vector<8x128xf32>
    %221 = arith.divf %219, %220 : vector<8x128xf32>
    %222 = vector.extract_strided_slice %215 {offsets = [0, 128], sizes = [8, 128], strides = [1, 1]} : vector<8x512xf32> to vector<8x128xf32>
    %223 = arith.negf %222 : vector<8x128xf32>
    %224 = math.exp %223 : vector<8x128xf32>
    %cst_38 = arith.constant 1.000000e+00 : f32
    %225 = vector.broadcast %cst_38 : f32 to vector<8x128xf32>
    %226 = arith.addf %225, %224 : vector<8x128xf32>
    %227 = arith.divf %225, %226 : vector<8x128xf32>
    %228 = vector.extract_strided_slice %215 {offsets = [0, 256], sizes = [8, 128], strides = [1, 1]} : vector<8x512xf32> to vector<8x128xf32>
    %229 = math.tanh %228 : vector<8x128xf32>
    %230 = vector.extract_strided_slice %215 {offsets = [0, 384], sizes = [8, 128], strides = [1, 1]} : vector<8x512xf32> to vector<8x128xf32>
    %231 = arith.negf %230 : vector<8x128xf32>
    %232 = math.exp %231 : vector<8x128xf32>
    %cst_39 = arith.constant 1.000000e+00 : f32
    %233 = vector.broadcast %cst_39 : f32 to vector<8x128xf32>
    %234 = arith.addf %233, %232 : vector<8x128xf32>
    %235 = arith.divf %233, %234 : vector<8x128xf32>
    %236 = arith.mulf %227, %209 : vector<8x128xf32>
    %237 = arith.mulf %221, %229 : vector<8x128xf32>
    %238 = arith.addf %236, %237 : vector<8x128xf32>
    %239 = math.tanh %238 : vector<8x128xf32>
    %240 = arith.mulf %235, %239 : vector<8x128xf32>
    %241 = arith.maximumf %212, %240 : vector<8x128xf32>
    %242 = vector.extract_strided_slice %0 {offsets = [0, 0], sizes = [8, 64], strides = [1, 1]} : vector<64x64xf32> to vector<8x64xf32>
    %243 = vector.extract_strided_slice %0 {offsets = [8, 0], sizes = [8, 64], strides = [1, 1]} : vector<64x64xf32> to vector<8x64xf32>
    %244 = arith.maximumf %242, %243 : vector<8x64xf32>
    %245 = vector.extract_strided_slice %0 {offsets = [16, 0], sizes = [8, 64], strides = [1, 1]} : vector<64x64xf32> to vector<8x64xf32>
    %246 = arith.maximumf %244, %245 : vector<8x64xf32>
    %247 = vector.extract_strided_slice %0 {offsets = [24, 0], sizes = [8, 64], strides = [1, 1]} : vector<64x64xf32> to vector<8x64xf32>
    %248 = arith.maximumf %246, %247 : vector<8x64xf32>
    %249 = vector.extract_strided_slice %0 {offsets = [32, 0], sizes = [8, 64], strides = [1, 1]} : vector<64x64xf32> to vector<8x64xf32>
    %250 = arith.maximumf %248, %249 : vector<8x64xf32>
    %251 = vector.extract_strided_slice %0 {offsets = [40, 0], sizes = [8, 64], strides = [1, 1]} : vector<64x64xf32> to vector<8x64xf32>
    %252 = arith.maximumf %250, %251 : vector<8x64xf32>
    %253 = vector.extract_strided_slice %0 {offsets = [48, 0], sizes = [8, 64], strides = [1, 1]} : vector<64x64xf32> to vector<8x64xf32>
    %254 = arith.maximumf %252, %253 : vector<8x64xf32>
    %255 = vector.extract_strided_slice %0 {offsets = [56, 0], sizes = [8, 64], strides = [1, 1]} : vector<64x64xf32> to vector<8x64xf32>
    %256 = arith.maximumf %254, %255 : vector<8x64xf32>
    %cst_40 = arith.constant 0.000000e+00 : f32
    %257 = vector.broadcast %cst_40 : f32 to vector<8x64xf32>
    %258 = arith.maximumf %256, %257 : vector<8x64xf32>
    %c0_41 = arith.constant 0 : index
    %c0_42 = arith.constant 0 : index
    %259 = vector.load %arg2[%c0_41, %c0_42] : memref<200x128xf32, #tpu.memory_space<vmem>>, vector<64x128xf32>
    %c64_43 = arith.constant 64 : index
    %c0_44 = arith.constant 0 : index
    %260 = vector.load %arg2[%c64_43, %c0_44] : memref<200x128xf32, #tpu.memory_space<vmem>>, vector<128x128xf32>
    %c192_45 = arith.constant 192 : index
    %c0_46 = arith.constant 0 : index
    %261 = vector.load %arg2[%c192_45, %c0_46] : memref<200x128xf32, #tpu.memory_space<vmem>>, vector<1x128xf32>
    %cst_47 = arith.constant dense<0.000000e+00> : vector<8x128xf32>
    %262 = tpu.matmul %258, %259, %cst_47 {dimension_numbers = #tpu.dot_dimension_numbers<[1], [0], [0], [1], [0, 0, 1, 1], [], []>} : vector<8x64xf32>, vector<64x128xf32>, vector<8x128xf32> -> vector<8x128xf32>
    %cst_48 = arith.constant dense<0.000000e+00> : vector<8x128xf32>
    %263 = tpu.matmul %241, %260, %cst_48 {dimension_numbers = #tpu.dot_dimension_numbers<[1], [0], [0], [1], [0, 0, 1, 1], [], []>} : vector<8x128xf32>, vector<128x128xf32>, vector<8x128xf32> -> vector<8x128xf32>
    %264 = arith.addf %262, %263 : vector<8x128xf32>
    %265 = vector.broadcast %261 : vector<1x128xf32> to vector<8x128xf32>
    %266 = arith.addf %264, %265 : vector<8x128xf32>
    %c0_49 = arith.constant 0 : index
    %c0_50 = arith.constant 0 : index
    %267 = vector.load %arg3[%c0_49, %c0_50] : memref<8x128xf32, #tpu.memory_space<vmem>>, vector<8x128xf32>
    tpu.vector_store %arg3[%c0_49, %c0_50], %266 {strides = array<i32>} : memref<8x128xf32, #tpu.memory_space<vmem>>, vector<8x128xf32>,
    return
  }
}

</mosaic_0001>

<bundles_post_ra>
// kernel: tpu_custom_call.1
= control target key start
LH: loop header
LB: loop body
LE: loop exit
PB: predicated region body
PF: predicated region fallthrough
CT: control target
= control target key end

     0   :  { %8 = vsyncpa [#allocation3], 0  ;;  %s3473_s0 = inlined_call_operand.hbm [shape: f32[64,64], index: 0, kind: input, shape index: {}]   ;;  %s3474_s1 = inlined_call_operand.hbm [shape: f32[200,512], index: 1, kind: input, shape index: {}]   ;;  %s3475_s2 = inlined_call_operand.hbm [shape: f32[200,128], index: 2, kind: input, shape index: {}]   ;;  %s3476_s3 = inlined_call_operand.hbm [shape: f32[8,128], index: 3, kind: output, shape index: {}]  }
   0x1   :  { %9 = vsyncpa [#allocation6], 0 }
   0x2   :  { %10 = vsyncpa [#allocation4], 0  ;;  %s2378_s12 = smov [#allocation5]  }
   0x3   :  { %s28_s13 = sshll.u32 %s2378_s12, 4  ;;  %s29_s13 = int_to_ptr.vmem [resolvable:$true] %s28_s13 }
   0x4   :  { %s2300_s14 = scalar_lea.vmem %s29_s13, 12800  ;;  %p2305_p1 = scmp.lt.s32.totalorder %s29_s13, %s29_s13 }
   0x5   :  { %p2301_p0 = scmp.ne.s32.totalorder %s29_s13, %s2300_s14  ;;  %p2306_p2 = scmp.lt.s32.totalorder %s2300_s14, %s2300_s14 }
   0x7   :  { %p2307_p3 = por %p2306_p2, %p2305_p1 }
   0x9   :  { %p2308_p4 = pnand %p2307_p3, %p2301_p0 }
   0xb   :  { %2311 = shalt.err (!%p2308_p4)
}
   0xc   :  { %s2379_s15 = smov 512   ;;  %s2380_s16 = smov 32  }
   0xd   :  { %34 = dma.hbm_to_vmem [thread:$0]  %s3474_s1, 12800, %s29_s13, [#allocation6], %s2379_s15, %s2379_s15, %s2380_s16  }
   0xe   :  { %s2381_s19 = smov [#allocation2]  }
   0xf   :  { %s16_s20 = sshll.u32 %s2381_s19, 4  ;;  %s17_s20 = int_to_ptr.vmem [resolvable:$true] %s16_s20 }
  0x10   :  { %s2320_s21 = scalar_lea.vmem %s17_s20, 1024  ;;  %p2325_p6 = scmp.lt.s32.totalorder %s17_s20, %s17_s20 }
  0x11   :  { %p2321_p5 = scmp.ne.s32.totalorder %s17_s20, %s2320_s21  ;;  %p2326_p7 = scmp.lt.s32.totalorder %s2320_s21, %s2320_s21 }
  0x13   :  { %p2327_p8 = por %p2326_p7, %p2325_p6 }
  0x15   :  { %p2328_p9 = pnand %p2327_p8, %p2321_p5 }
  0x17   :  { %2331 = shalt.err (!%p2328_p9)
}
  0x18   :  { %s2382_s22 = smov 128   ;;  %s2383_s23 = smov 8  }
  0x19   :  { %22 = dma.hbm_to_vmem [thread:$0]  %s3473_s0, 1024, %s17_s20, [#allocation3], %s2382_s22, %s2382_s22, %s2383_s23  }
  0x1a   :  { %s2384_s26 = smov [#allocation7]  }
  0x1b   :  { %s40_s27 = sshll.u32 %s2384_s26, 4  ;;  %s41_s27 = int_to_ptr.vmem [resolvable:$true] %s40_s27 }
  0x1c   :  { %s2340_s1 = scalar_lea.vmem %s41_s27, 3200  ;;  %p2345_p11 = scmp.lt.s32.totalorder %s41_s27, %s41_s27 }
  0x1d   :  { %p2341_p10 = scmp.ne.s32.totalorder %s41_s27, %s2340_s1  ;;  %p2346_p12 = scmp.lt.s32.totalorder %s2340_s1, %s2340_s1 }
  0x1f   :  { %p2347_p13 = por %p2346_p12, %p2345_p11 }
  0x21   :  { %p2348_p0 = pnand %p2347_p13, %p2341_p10 }
  0x23   :  { %2351 = shalt.err (!%p2348_p0)
}
  0x24   :  { %46 = dma.hbm_to_vmem [thread:$0]  %s3475_s2, 3200, %s41_s27, [#allocation6], %s2382_s22, %s2382_s22, %s2383_s23  }
  0x25   :  { %2372 = dma.done.wait [#allocation3], 1024  }
  0x26   :  { %2373 = vsyncadd [#allocation3], 4294966272 }
  0x27   :  { %2374 = dma.done.wait [#allocation6], 16000  }
  0x28   :  { %2375 = vsyncadd [#allocation6], 4294951296  ;;  %v3477_v0 = vmov 0.0   ;;  %v93_v1 = vld [vmem:[#allocation5 + $0xe8] sm:$0xff]  ;;  %v95_v2 = vld [vmem:[#allocation5 + $0xf8] sm:$0xff]  ;;  %vm183_vm0 = vcmask 523264  }
  0x29   :  { %272 = vmatprep.mubr.f32.mxu0 %v3477_v0  ;;  %385 = vmatprep.mubr.f32.mxu1 %v3477_v0  ;;  %v92_v3 = vld [vmem:[#allocation5 + $0xe0] sm:$0xff]  ;;  %v94_v4 = vld [vmem:[#allocation5 + $0xf0] sm:$0xff]  ;;  %v89_v5 = vld [vmem:[#allocation5 + $0xc8] sm:$0xff]  ;;  %vm2386_vm1 = vmmov 0   ;;  %s2387_s0 = smov [#allocation8]  }
  0x2a   :  { %224 = vmatprep.subr.mxu0 %v93_v1  ;;  %337 = vmatprep.subr.mxu1 %v95_v2  ;;  %v91_v6 = vld [vmem:[#allocation5 + $0xd8] sm:$0xff]  ;;  %v88_v7 = vld [vmem:[#allocation5 + $0xc0] sm:$0xff]  ;;  %v90_v8 = vld [vmem:[#allocation5 + $0xd0] sm:$0xff]  ;;  %s1958_s2 = sshll.u32 %s2387_s0, 4  ;;  %s1959_s2 = int_to_ptr.vmem [resolvable:$true] %s1958_s2 }
  0x2b   :  { %225 = vmatpush1.msra.mxu0 %v92_v3  ;;  %338 = vmatpush1.msra.mxu1 %v94_v4  ;;  %v85_v9 = vld [vmem:[#allocation5 + $0xa8] sm:$0xff]  ;;  %v87_v10 = vld [vmem:[#allocation5 + $0xb8] sm:$0xff]  ;;  %v84_v11 = vld [vmem:[#allocation5 + $0xa0] sm:$0xff]  ;;  %s2352_s30 = scalar_lea.vmem %s1959_s2, 128  ;;  %p2357_p2 = scmp.lt.s32.totalorder %s1959_s2, %s1959_s2 }
  0x2c   :  { %226 = vmatprep.subr.mxu0 %v89_v5  ;;  %339 = vmatprep.subr.mxu1 %v91_v6  ;;  %v86_v12 = vld [vmem:[#allocation5 + $0xb0] sm:$0xff]  ;;  %v81_v13 = vld [vmem:[#allocation5 + $0x88] sm:$0xff]  ;;  %v83_v14 = vld [vmem:[#allocation5 + $0x98] sm:$0xff]  ;;  %p2353_p1 = scmp.ne.s32.totalorder %s1959_s2, %s2352_s30  ;;  %p2358_p3 = scmp.lt.s32.totalorder %s2352_s30, %s2352_s30 }
  0x2d   :  { %227 = vmatpush1.msra.mxu0 %v88_v7  ;;  %340 = vmatpush1.msra.mxu1 %v90_v8  ;;  %v80_v15 = vld [vmem:[#allocation5 + $0x80] sm:$0xff]  ;;  %v82_v16 = vld [vmem:[#allocation5 + $0x90] sm:$0xff]  ;;  %v77_v17 = vld [vmem:[#allocation5 + $0x68] sm:$0xff] }
  0x2e   :  { %228 = vmatprep.subr.mxu0 %v85_v9  ;;  %341 = vmatprep.subr.mxu1 %v87_v10  ;;  %v79_v18 = vld [vmem:[#allocation5 + $0x78] sm:$0xff]  ;;  %v76_v19 = vld [vmem:[#allocation5 + $0x60] sm:$0xff]  ;;  %v78_v20 = vld [vmem:[#allocation5 + $0x70] sm:$0xff]  ;;  %p2359_p4 = por %p2358_p3, %p2357_p2 }
  0x2f   :  { %229 = vmatpush1.msra.mxu0 %v84_v11  ;;  %342 = vmatpush1.msra.mxu1 %v86_v12  ;;  %v73_v21 = vld [vmem:[#allocation5 + $0x48] sm:$0xff]  ;;  %v75_v22 = vld [vmem:[#allocation5 + $0x58] sm:$0xff]  ;;  %v72_v23 = vld [vmem:[#allocation5 + $0x40] sm:$0xff] }
  0x30   :  { %230 = vmatprep.subr.mxu0 %v81_v13  ;;  %343 = vmatprep.subr.mxu1 %v83_v14  ;;  %v74_v24 = vld [vmem:[#allocation5 + $0x50] sm:$0xff]  ;;  %v69_v25 = vld [vmem:[#allocation5 + $0x28] sm:$0xff]  ;;  %v71_v26 = vld [vmem:[#allocation5 + $0x38] sm:$0xff]  ;;  %p2360_p5 = pnand %p2359_p4, %p2353_p1 }
  0x31   :  { %231 = vmatpush1.msra.mxu0 %v80_v15  ;;  %344 = vmatpush1.msra.mxu1 %v82_v16  ;;  %v68_v27 = vld [vmem:[#allocation5 + $0x20] sm:$0xff]  ;;  %v70_v28 = vld [vmem:[#allocation5 + $0x30] sm:$0xff]  ;;  %v65_v29 = vld [vmem:[#allocation5 + $0x8] sm:$0xff] }
  0x32   :  { %232 = vmatprep.subr.mxu0 %v77_v17  ;;  %345 = vmatprep.subr.mxu1 %v79_v18  ;;  %v67_v30 = vld [vmem:[#allocation5 + $0x18] sm:$0xff]  ;;  %v64_v31 = vld [vmem:[#allocation5] sm:$0xff]  ;;  %v66_v32 = vld [vmem:[#allocation5 + $0x10] sm:$0xff] }
  0x33   :  { %233 = vmatpush1.msra.mxu0 %v76_v19  ;;  %346 = vmatpush1.msra.mxu1 %v78_v20  ;;  %v56_v33 = vld [vmem:[#allocation2] sm:$0xff]  ;;  %v57_v34 = vld [vmem:[#allocation2 + $0x8] sm:$0xff]  ;;  %v2421_v37 = vld [vmem:[#allocation5 + $0x2f8] sm:$0xff] }
  0x34   :  { %234 = vmatprep.subr.mxu0 %v73_v21  ;;  %347 = vmatprep.subr.mxu1 %v75_v22  ;;  %v1770_v35 = vmax.f32 %v56_v33, %v57_v34  ;;  %v2419_v36 = vld [vmem:[#allocation5 + $0x2e8] sm:$0xff]  ;;  %3575 = vst [vmem:[#allocation13_spill] sm:$0xff] %v2421_v37  ;;  %v2423_v38 = vld [vmem:[#allocation5 + $0x2e0] sm:$0xff]  ;;  %v2425_v39 = vld [vmem:[#allocation5 + $0x2f0] sm:$0xff] }
  0x35   :  { %235 = vmatpush1.msra.mxu0 %v72_v23  ;;  %348 = vmatpush1.msra.mxu1 %v74_v24  ;;  %3574 = vst [vmem:[#allocation12_spill] sm:$0xff] %v2419_v36  ;;  %v58_v40 = vld [vmem:[#allocation2 + $0x10] sm:$0xff]  ;;  %v2429_v41 = vld [vmem:[#allocation5 + $0x2c8] sm:$0xff]  ;;  %v2431_v42 = vld [vmem:[#allocation5 + $0x2d8] sm:$0xff] }
  0x36   :  { %236 = vmatprep.subr.mxu0 %v69_v25  ;;  %349 = vmatprep.subr.mxu1 %v71_v26  ;;  %v1771_v43 = vmax.f32 %v1770_v35, %v58_v40  ;;  %v2437_v44 = vld [vmem:[#allocation5 + $0x2c0] sm:$0xff]  ;;  %v2439_v45 = vld [vmem:[#allocation5 + $0x2d0] sm:$0xff]  ;;  %v59_v46 = vld [vmem:[#allocation2 + $0x18] sm:$0xff] }
  0x37   :  { %237 = vmatpush1.msra.mxu0 %v68_v27  ;;  %350 = vmatpush1.msra.mxu1 %v70_v28  ;;  %v2445_v48 = vld [vmem:[#allocation5 + $0x2a8] sm:$0xff]  ;;  %v2447_v49 = vld [vmem:[#allocation5 + $0x2b8] sm:$0xff]  ;;  %v2451_v50 = vld [vmem:[#allocation5 + $0x2a0] sm:$0xff] }
  0x38   :  { %238 = vmatprep.subr.mxu0 %v65_v29  ;;  %351 = vmatprep.subr.mxu1 %v67_v30  ;;  %v1772_v47 = vmax.f32 %v1771_v43, %v59_v46  ;;  %v2453_v51 = vld [vmem:[#allocation5 + $0x2b0] sm:$0xff]  ;;  %v2455_v52 = vld [vmem:[#allocation2 + $0x20] sm:$0xff]  ;;  %v2459_v53 = vld [vmem:[#allocation5 + $0x288] sm:$0xff] }
  0x39   :  { %239 = vmatpush1.msra.mxu0 %v64_v31  ;;  %352 = vmatpush1.msra.mxu1 %v66_v32  ;;  %v2461_v54 = vld [vmem:[#allocation5 + $0x298] sm:$0xff]  ;;  %v2468_v56 = vld [vmem:[#allocation5 + $0x280] sm:$0xff]  ;;  %v2470_v57 = vld [vmem:[#allocation5 + $0x290] sm:$0xff] }
  0x3a   :  { %1968 = vmatmul.mubr.msk.f32.vlgmr.msra.gmra.mxu0 %vm183_vm0, %v56_v33  ;;  %1976 = vmatmul.mubr.msk.f32.vlgmr.msra.gmra.mxu1 %vm183_vm0, %v56_v33  ;;  %v1773_v55 = vmax.f32 %v1772_v47, %v2455_v52  ;;  %v2472_v58 = vld [vmem:[#allocation2 + $0x28] sm:$0xff]  ;;  %v2481_v61 = vld [vmem:[#allocation5 + $0x278] sm:$0xff]  ;;  %v2485_v62 = vld [vmem:[#allocation5 + $0x260] sm:$0xff] }
  0x3b   :  { %434 = vmatprep.subr.mxu0 %v2419_v36  ;;  %505 = vmatprep.subr.mxu1 %v2421_v37  ;;  %v2479_v60 = vld [vmem:[#allocation5 + $0x268] sm:$0xff]  ;;  %v2487_v63 = vld [vmem:[#allocation5 + $0x270] sm:$0xff]  ;;  %v2495_v3 = vld [vmem:[#allocation5 + $0x258] sm:$0xff] }
  0x3c   :  { %435 = vmatpush1.msra.mxu0 %v2423_v38  ;;  %506 = vmatpush1.msra.mxu1 %v2425_v39  ;;  %v1774_v59 = vmax.f32 %v1773_v55, %v2472_v58  ;;  %v2489_v1 = vld [vmem:[#allocation2 + $0x30] sm:$0xff]  ;;  %v2493_v2 = vld [vmem:[#allocation5 + $0x248] sm:$0xff]  ;;  %v2504_v5 = vld [vmem:[#allocation5 + $0x240] sm:$0xff] }
  0x3d   :  { %436 = vmatprep.subr.mxu0 %v2429_v41  ;;  %507 = vmatprep.subr.mxu1 %v2431_v42  ;;  %v2506_v6 = vld [vmem:[#allocation5 + $0x250] sm:$0xff]  ;;  %v2508_v7 = vld [vmem:[#allocation2 + $0x38] sm:$0xff]  ;;  %v2516_v9 = vld [vmem:[#allocation5 + $0x228] sm:$0xff] }
  0x3e   :  { %278 = vmatprep.mubr.f32.mxu0 %v3477_v0  ;;  %391 = vmatprep.mubr.f32.mxu1 %v3477_v0  ;;  %v2498_v4 = vmax.f32 %v1774_v59, %v2489_v1  ;;  %3577 = vst [vmem:[#allocation15_spill] sm:$0xff] %v2508_v7  ;;  %v2518_v10 = vld [vmem:[#allocation5 + $0x238] sm:$0xff]  ;;  %v2522_v11 = vld [vmem:[#allocation5 + $0x220] sm:$0xff]  ;;  %v2524_v12 = vld [vmem:[#allocation5 + $0x230] sm:$0xff] }
  0x3f   :  { %437 = vmatpush1.msra.mxu0 %v2437_v44  ;;  %508 = vmatpush1.msra.mxu1 %v2439_v45  ;;  %v2528_v13 = vld [vmem:[#allocation5 + $0x208] sm:$0xff]  ;;  %v2530_v14 = vld [vmem:[#allocation5 + $0x218] sm:$0xff]  ;;  %v2536_v15 = vld [vmem:[#allocation5 + $0x200] sm:$0xff] }
  0x40   :  { %1969 = vmatmul.mubr.msk.f32.gmra.mxu0 %vm183_vm0, %v57_v34  ;;  %1977 = vmatmul.mubr.msk.f32.gmra.mxu1 %vm183_vm0, %v57_v34  ;;  %3576 = vst [vmem:[#allocation14_spill] sm:$0xff] %v2498_v4  ;;  %v2538_v16 = vld [vmem:[#allocation5 + $0x210] sm:$0xff]  ;;  %v2544_v17 = vld [vmem:[#allocation5 + $0x1e8] sm:$0xff]  ;;  %v2546_v18 = vld [vmem:[#allocation5 + $0x1f8] sm:$0xff] }
  0x41   :  { %438 = vmatprep.subr.mxu0 %v2445_v48  ;;  %509 = vmatprep.subr.mxu1 %v2447_v49  ;;  %v2550_v19 = vld [vmem:[#allocation5 + $0x1e0] sm:$0xff]  ;;  %v2552_v20 = vld [vmem:[#allocation5 + $0x1f0] sm:$0xff]  ;;  %v2558_v21 = vld [vmem:[#allocation5 + $0x1c8] sm:$0xff] }
  0x42   :  { %439 = vmatpush1.msra.mxu0 %v2451_v50  ;;  %510 = vmatpush1.msra.mxu1 %v2453_v51  ;;  %v2560_v22 = vld [vmem:[#allocation5 + $0x1d8] sm:$0xff]  ;;  %v2566_v23 = vld [vmem:[#allocation5 + $0x1c0] sm:$0xff]  ;;  %v2568_v24 = vld [vmem:[#allocation5 + $0x1d0] sm:$0xff] }
  0x43   :  { %440 = vmatprep.subr.mxu0 %v2459_v53  ;;  %511 = vmatprep.subr.mxu1 %v2461_v54  ;;  %v2574_v25 = vld [vmem:[#allocation5 + $0x1a8] sm:$0xff]  ;;  %v2576_v26 = vld [vmem:[#allocation5 + $0x1b8] sm:$0xff]  ;;  %v2580_v27 = vld [vmem:[#allocation5 + $0x1a0] sm:$0xff] }
  0x44   :  { %284 = vmatprep.mubr.f32.mxu0 %v3477_v0  ;;  %397 = vmatprep.mubr.f32.mxu1 %v3477_v0  ;;  %v2582_v28 = vld [vmem:[#allocation5 + $0x1b0] sm:$0xff]  ;;  %v2588_v29 = vld [vmem:[#allocation5 + $0x188] sm:$0xff]  ;;  %v2590_v30 = vld [vmem:[#allocation5 + $0x198] sm:$0xff] }
  0x45   :  { %441 = vmatpush1.msra.mxu0 %v2468_v56  ;;  %512 = vmatpush1.msra.mxu1 %v2470_v57  ;;  %3578 = vst [vmem:[#allocation16_spill] sm:$0xff] %v2588_v29  ;;  %3579 = vst [vmem:[#allocation17_spill] sm:$0xff] %v2590_v30  ;;  %v2596_v31 = vld [vmem:[#allocation5 + $0x180] sm:$0xff]  ;;  %v2598_v32 = vld [vmem:[#allocation5 + $0x190] sm:$0xff] }
  0x46   :  { %1970 = vmatmul.mubr.msk.f32.gmra.mxu0 %vm183_vm0, %v58_v40  ;;  %1978 = vmatmul.mubr.msk.f32.gmra.mxu1 %vm183_vm0, %v58_v40  ;;  %3580 = vst [vmem:[#allocation18_spill] sm:$0xff] %v2596_v31  ;;  %3581 = vst [vmem:[#allocation19_spill] sm:$0xff] %v2598_v32  ;;  %v2604_v33 = vld [vmem:[#allocation5 + $0x168] sm:$0xff]  ;;  %v2606_v34 = vld [vmem:[#allocation5 + $0x178] sm:$0xff] }
  0x47   :  { %442 = vmatprep.subr.mxu0 %v2479_v60  ;;  %513 = vmatprep.subr.mxu1 %v2481_v61  ;;  %3582 = vst [vmem:[#allocation20_spill] sm:$0xff] %v2604_v33  ;;  %3583 = vst [vmem:[#allocation21_spill] sm:$0xff] %v2606_v34  ;;  %v2610_v35 = vld [vmem:[#allocation5 + $0x160] sm:$0xff]  ;;  %v2612_v40 = vld [vmem:[#allocation5 + $0x170] sm:$0xff] }
  0x48   :  { %443 = vmatpush1.msra.mxu0 %v2485_v62  ;;  %514 = vmatpush1.msra.mxu1 %v2487_v63  ;;  %3584 = vst [vmem:[#allocation22_spill] sm:$0xff] %v2610_v35  ;;  %3585 = vst [vmem:[#allocation23_spill] sm:$0xff] %v2612_v40  ;;  %v2618_v43 = vld [vmem:[#allocation5 + $0x148] sm:$0xff]  ;;  %v2626_v47 = vld [vmem:[#allocation5 + $0x140] sm:$0xff] }
  0x49   :  { %444 = vmatprep.subr.mxu0 %v2493_v2  ;;  %515 = vmatprep.subr.mxu1 %v2495_v3  ;;  %3586 = vst [vmem:[#allocation24_spill] sm:$0xff] %v2618_v43  ;;  %3588 = vst [vmem:[#allocation26_spill] sm:$0xff] %v2626_v47  ;;  %v2634_v55 = vld [vmem:[#allocation5 + $0x128] sm:$0xff]  ;;  %v2640_v59 = vld [vmem:[#allocation5 + $0x120] sm:$0xff] }
  0x4a   :  { %290 = vmatprep.mubr.f32.mxu0 %v3477_v0  ;;  %403 = vmatprep.mubr.f32.mxu1 %v3477_v0  ;;  %3590 = vst [vmem:[#allocation28_spill] sm:$0xff] %v2634_v55  ;;  %3592 = vst [vmem:[#allocation30_spill] sm:$0xff] %v2640_v59  ;;  %v2648_v8 = vld [vmem:[#allocation5 + $0x108] sm:$0xff]  ;;  %v2654_v4 = vld [vmem:[#allocation5 + $0x100] sm:$0xff] }
  0x4b   :  { %445 = vmatpush1.msra.mxu0 %v2504_v5  ;;  %516 = vmatpush1.msra.mxu1 %v2506_v6  ;;  %3594 = vst [vmem:[#allocation32_spill] sm:$0xff] %v2648_v8  ;;  %3596 = vst [vmem:[#allocation34_spill] sm:$0xff] %v2654_v4 }
  0x4c   :  { %1971 = vmatmul.mubr.msk.f32.gmra.mxu0 %vm183_vm0, %v59_v46  ;;  %1979 = vmatmul.mubr.msk.f32.gmra.mxu1 %vm183_vm0, %v59_v46  ;;  %v2620_v46 = vld [vmem:[#allocation5 + $0x158] sm:$0xff] }
  0x4d   :  { %446 = vmatprep.subr.mxu0 %v2516_v9  ;;  %517 = vmatprep.subr.mxu1 %v2518_v10  ;;  %3587 = vst [vmem:[#allocation25_spill] sm:$0xff] %v2620_v46 }
  0x4e   :  { %447 = vmatpush1.msra.mxu0 %v2522_v11  ;;  %518 = vmatpush1.msra.mxu1 %v2524_v12 }
  0x4f   :  { %448 = vmatprep.subr.mxu0 %v2528_v13  ;;  %519 = vmatprep.subr.mxu1 %v2530_v14 }
  0x50   :  { %296 = vmatprep.mubr.f32.mxu0 %v3477_v0  ;;  %409 = vmatprep.mubr.f32.mxu1 %v3477_v0 }
  0x51   :  { %449 = vmatpush1.msra.mxu0 %v2536_v15  ;;  %520 = vmatpush1.msra.mxu1 %v2538_v16 }
  0x52   :  { %1972 = vmatmul.mubr.msk.f32.gmra.mxu0 %vm183_vm0, %v2455_v52  ;;  %1980 = vmatmul.mubr.msk.f32.gmra.mxu1 %vm183_vm0, %v2455_v52  ;;  %v2628_v52 = vld [vmem:[#allocation5 + $0x150] sm:$0xff] }
  0x53   :  { %450 = vmatprep.subr.mxu0 %v2544_v17  ;;  %521 = vmatprep.subr.mxu1 %v2546_v18  ;;  %3589 = vst [vmem:[#allocation27_spill] sm:$0xff] %v2628_v52 }
  0x54   :  { %451 = vmatpush1.msra.mxu0 %v2550_v19  ;;  %522 = vmatpush1.msra.mxu1 %v2552_v20 }
  0x55   :  { %452 = vmatprep.subr.mxu0 %v2558_v21  ;;  %523 = vmatprep.subr.mxu1 %v2560_v22 }
  0x56   :  { %302 = vmatprep.mubr.f32.mxu0 %v3477_v0  ;;  %415 = vmatprep.mubr.f32.mxu1 %v3477_v0 }
  0x57   :  { %453 = vmatpush1.msra.mxu0 %v2566_v23  ;;  %524 = vmatpush1.msra.mxu1 %v2568_v24 }
  0x58   :  { %1973 = vmatmul.mubr.msk.f32.gmra.mxu0 %vm183_vm0, %v2472_v58  ;;  %1981 = vmatmul.mubr.msk.f32.gmra.mxu1 %vm183_vm0, %v2472_v58  ;;  %v2636_v58 = vld [vmem:[#allocation5 + $0x138] sm:$0xff] }
  0x59   :  { %454 = vmatprep.subr.mxu0 %v2574_v25  ;;  %525 = vmatprep.subr.mxu1 %v2576_v26  ;;  %3591 = vst [vmem:[#allocation29_spill] sm:$0xff] %v2636_v58 }
  0x5a   :  { %455 = vmatpush1.msra.mxu0 %v2580_v27  ;;  %526 = vmatpush1.msra.mxu1 %v2582_v28 }
  0x5b   :  { %456 = vmatprep.subr.mxu0 %v2588_v29  ;;  %527 = vmatprep.subr.mxu1 %v2590_v30 }
  0x5c   :  { %308 = vmatprep.mubr.f32.mxu0 %v3477_v0  ;;  %421 = vmatprep.mubr.f32.mxu1 %v3477_v0 }
  0x5d   :  { %457 = vmatpush1.msra.mxu0 %v2596_v31  ;;  %528 = vmatpush1.msra.mxu1 %v2598_v32 }
  0x5e   :  { %1974 = vmatmul.mubr.msk.f32.gmra.mxu0 %vm183_vm0, %v2489_v1  ;;  %1982 = vmatmul.mubr.msk.f32.gmra.mxu1 %vm183_vm0, %v2489_v1  ;;  %v2642_v1 = vld [vmem:[#allocation5 + $0x130] sm:$0xff] }
  0x5f   :  { %458 = vmatprep.subr.mxu0 %v2604_v33  ;;  %529 = vmatprep.subr.mxu1 %v2606_v34  ;;  %3593 = vst [vmem:[#allocation31_spill] sm:$0xff] %v2642_v1 }
  0x60   :  { %459 = vmatpush1.msra.mxu0 %v2610_v35  ;;  %530 = vmatpush1.msra.mxu1 %v2612_v40 }
  0x61   :  { %460 = vmatprep.subr.mxu0 %v2618_v43  ;;  %531 = vmatprep.subr.mxu1 %v2620_v46 }
  0x62   :  { %314 = vmatprep.mubr.f32.mxu0 %v3477_v0  ;;  %427 = vmatprep.mubr.f32.mxu1 %v3477_v0  ;;  %v2650_v0 = vld [vmem:[#allocation5 + $0x118] sm:$0xff] }
  0x63   :  { %461 = vmatpush1.msra.mxu0 %v2626_v47  ;;  %532 = vmatpush1.msra.mxu1 %v2628_v52  ;;  %3595 = vst [vmem:[#allocation33_spill] sm:$0xff] %v2650_v0  ;;  %v2658_v52 = vld [vmem:[#allocation5 + $0x110] sm:$0xff] }
  0x64   :  { %1975 = vmatmul.mubr.msk.f32.gmra.mxu0 %vm183_vm0, %v2508_v7  ;;  %1983 = vmatmul.mubr.msk.f32.gmra.mxu1 %vm183_vm0, %v2508_v7  ;;  %3597 = vst [vmem:[#allocation35_spill] sm:$0xff] %v2658_v52  ;;  %v3598_v7 = vmov 0.0  }
  0x65   :  { %462 = vmatprep.subr.mxu0 %v2634_v55  ;;  %533 = vmatprep.subr.mxu1 %v2636_v58 }
  0x66   :  { %463 = vmatpush1.msra.mxu0 %v2640_v59  ;;  %534 = vmatpush1.msra.mxu1 %v2642_v1 }
  0x67   :  { %464 = vmatprep.subr.mxu0 %v2648_v8  ;;  %535 = vmatprep.subr.mxu1 %v2650_v0 }
  0x68   :  { %465 = vmatpush1.msra.mxu0 %v2654_v4  ;;  %498 = vmatprep.mubr.f32.mxu0 %v3598_v7 }
  0x69   :  { %536 = vmatpush1.msra.mxu1 %v2658_v52  ;;  %569 = vmatprep.mubr.f32.mxu1 %v3598_v7 }
  0x6a   :  { %499 = vmatmul.mubr.f32.vlgmr.msra.gmra.mxu0 %v3598_v7  ;;  %570 = vmatmul.mubr.f32.vlgmr.msra.gmra.mxu1 %v3598_v7 }
  0x6b   :  { %601 = vmatprep.subr.mxu0 %v2419_v36  ;;  %672 = vmatprep.subr.mxu1 %v2421_v37 }
  0x6c   :  { %602 = vmatpush1.msra.mxu0 %v2423_v38  ;;  %673 = vmatpush1.msra.mxu1 %v2425_v39 }
  0x6d   :  { %603 = vmatprep.subr.mxu0 %v2429_v41  ;;  %674 = vmatprep.subr.mxu1 %v2431_v42 }
  0x6e   :  { %604 = vmatpush1.msra.mxu0 %v2437_v44  ;;  %675 = vmatpush1.msra.mxu1 %v2439_v45 }
  0x6f   :  { %605 = vmatprep.subr.mxu0 %v2445_v48  ;;  %676 = vmatprep.subr.mxu1 %v2447_v49 }
  0x70   :  { %606 = vmatpush1.msra.mxu0 %v2451_v50  ;;  %677 = vmatpush1.msra.mxu1 %v2453_v51 }
  0x71   :  { %607 = vmatprep.subr.mxu0 %v2459_v53  ;;  %678 = vmatprep.subr.mxu1 %v2461_v54 }
  0x72   :  { %608 = vmatpush1.msra.mxu0 %v2468_v56  ;;  %679 = vmatpush1.msra.mxu1 %v2470_v57 }
  0x73   :  { %609 = vmatprep.subr.mxu0 %v2479_v60  ;;  %680 = vmatprep.subr.mxu1 %v2481_v61 }
  0x74   :  { %610 = vmatpush1.msra.mxu0 %v2485_v62  ;;  %681 = vmatpush1.msra.mxu1 %v2487_v63 }
  0x75   :  { %611 = vmatprep.subr.mxu0 %v2493_v2  ;;  %682 = vmatprep.subr.mxu1 %v2495_v3 }
  0x76   :  { %612 = vmatpush1.msra.mxu0 %v2504_v5  ;;  %683 = vmatpush1.msra.mxu1 %v2506_v6 }
  0x77   :  { %613 = vmatprep.subr.mxu0 %v2516_v9  ;;  %684 = vmatprep.subr.mxu1 %v2518_v10 }
  0x78   :  { %614 = vmatpush1.msra.mxu0 %v2522_v11  ;;  %685 = vmatpush1.msra.mxu1 %v2524_v12 }
  0x79   :  { %615 = vmatprep.subr.mxu0 %v2528_v13  ;;  %686 = vmatprep.subr.mxu1 %v2530_v14 }
  0x7a   :  { %616 = vmatpush1.msra.mxu0 %v2536_v15  ;;  %687 = vmatpush1.msra.mxu1 %v2538_v16 }
  0x7b   :  { %617 = vmatprep.subr.mxu0 %v2544_v17  ;;  %688 = vmatprep.subr.mxu1 %v2546_v18 }
  0x7c   :  { %618 = vmatpush1.msra.mxu0 %v2550_v19  ;;  %689 = vmatpush1.msra.mxu1 %v2552_v20 }
  0x7d   :  { %619 = vmatprep.subr.mxu0 %v2558_v21  ;;  %690 = vmatprep.subr.mxu1 %v2560_v22 }
  0x7e   :  { %620 = vmatpush1.msra.mxu0 %v2566_v23  ;;  %691 = vmatpush1.msra.mxu1 %v2568_v24 }
  0x7f   :  { %621 = vmatprep.subr.mxu0 %v2574_v25  ;;  %692 = vmatprep.subr.mxu1 %v2576_v26 }
  0x80   :  { %622 = vmatpush1.msra.mxu0 %v2580_v27  ;;  %693 = vmatpush1.msra.mxu1 %v2582_v28 }
  0x81   :  { %623 = vmatprep.subr.mxu0 %v2588_v29  ;;  %694 = vmatprep.subr.mxu1 %v2590_v30  ;;  %v3599_v29 = vld [vmem:[#allocation27_spill] sm:$0xff] }
  0x82   :  { %624 = vmatpush1.msra.mxu0 %v2596_v31  ;;  %695 = vmatpush1.msra.mxu1 %v2598_v32 }
  0x83   :  { %625 = vmatprep.subr.mxu0 %v2604_v33  ;;  %696 = vmatprep.subr.mxu1 %v2606_v34 }
  0x84   :  { %626 = vmatpush1.msra.mxu0 %v2610_v35  ;;  %697 = vmatpush1.msra.mxu1 %v2612_v40 }
  0x85   :  { %627 = vmatprep.subr.mxu0 %v2618_v43  ;;  %698 = vmatprep.subr.mxu1 %v2620_v46 }
  0x86   :  { %628 = vmatpush1.msra.mxu0 %v2626_v47  ;;  %699 = vmatpush1.msra.mxu1 %v3599_v29  ;;  %v161_v29 = vld [vmem:[#allocation5 + $0x300] ss:$8 sm:$0xf] }
  0x87   :  { %629 = vmatprep.subr.mxu0 %v2634_v55  ;;  %700 = vmatprep.subr.mxu1 %v2636_v58  ;;  %v163_v58 = vlaneseq }
  0x88   :  { %630 = vmatpush1.msra.mxu0 %v2640_v59  ;;  %701 = vmatpush1.msra.mxu1 %v2642_v1 }
  0x89   :  { %631 = vmatprep.subr.mxu0 %v2648_v8  ;;  %702 = vmatprep.subr.mxu1 %v2650_v0  ;;  %v164_v59 = vshrl.u32 %v163_v58, 7 }
  0x8a   :  { %632 = vmatpush1.msra.mxu0 %v2654_v4  ;;  %665 = vmatprep.mubr.f32.mxu0 %v3598_v7 }
  0x8b   :  { %703 = vmatpush1.msra.mxu1 %v2658_v52  ;;  %736 = vmatprep.mubr.f32.mxu1 %v3598_v7  ;;  %v165_v8 = vsub.s32 0, %v164_v59  ;;  %v173_v0 = vsub.s32 2, %v164_v59  ;;  %v169_v52 = vsub.s32 1, %v164_v59  ;;  %v177_v46 = vsub.s32 3, %v164_v59 }
  0x8c   :  { %768 = vmatprep.subr.mxu0 %v2419_v36  ;;  %839 = vmatprep.subr.mxu1 %v2421_v37 }
  0x8d   :  { %v166_v7 = vrot.slane %v161_v29, %v165_v8  ;;  %v2744_v43 = vrot.slane %v161_v29, %v173_v0  ;;  %v170_v40 = vrot.slane %v161_v29, %v169_v52  ;;  %v2746_v58 = vrot.slane %v161_v29, %v177_v46 }
  0xfa   :  { %v2736_v55 = vpop.f32.mrf.mxu0  ;;  %v2738_v1 = vpop.f32.mrf.mxu1 }
  0xfc   :  { %v2740_v4 = vpop.f32.mrf.mxu0  ;;  %v2742_v47 = vpop.f32.mrf.mxu1 }
 0x100   :  { %v280_v36 = vpop.f32.mrf.mxu0  ;;  %v393_v37 = vpop.f32.mrf.mxu1 }
 0x101   :  { %v2748_v35 = vadd.f32 %v280_v36, %v166_v7  ;;  %v2751_v34 = vadd.f32 %v393_v37, %v2744_v43 }
 0x102   :  { %v282_v33 = vpop.f32.mrf.mxu0  ;;  %v395_v32 = vpop.f32.mrf.mxu1 }
 0x103   :  { %3600 = vst [vmem:[#allocation36_spill] sm:$0xff] %v2748_v35  ;;  %3601 = vst [vmem:[#allocation37_spill] sm:$0xff] %v2751_v34  ;;  %v2753_v31 = vadd.f32 %v282_v33, %v170_v40  ;;  %v2756_v30 = vadd.f32 %v395_v32, %v2746_v58 }
 0x105   :  { %3602 = vst [vmem:[#allocation38_spill] sm:$0xff] %v2753_v31  ;;  %3603 = vst [vmem:[#allocation39_spill] sm:$0xff] %v2756_v30 }
 0x106   :  { %v286_v8 = vpop.f32.mrf.mxu0  ;;  %v399_v0 = vpop.f32.mrf.mxu1 }
 0x107   :  { %v2758_v59 = vadd.f32 %v286_v8, %v166_v7  ;;  %v2761_v52 = vadd.f32 %v399_v0, %v2744_v43 }
 0x108   :  { %v288_v29 = vpop.f32.mrf.mxu0  ;;  %v401_v36 = vpop.f32.mrf.mxu1 }
 0x109   :  { %3604 = vst [vmem:[#allocation40_spill] sm:$0xff] %v2758_v59  ;;  %3605 = vst [vmem:[#allocation41_spill] sm:$0xff] %v2761_v52  ;;  %v2763_v46 = vadd.f32 %v288_v29, %v170_v40  ;;  %v2766_v37 = vadd.f32 %v401_v36, %v2746_v58 }
 0x10b   :  { %3606 = vst [vmem:[#allocation42_spill] sm:$0xff] %v2763_v46  ;;  %3607 = vst [vmem:[#allocation43_spill] sm:$0xff] %v2766_v37 }
 0x10c   :  { %v292_v34 = vpop.f32.mrf.mxu0  ;;  %v405_v33 = vpop.f32.mrf.mxu1 }
 0x10d   :  { %v2768_v31 = vadd.f32 %v292_v34, %v166_v7  ;;  %v2771_v32 = vadd.f32 %v405_v33, %v2744_v43 }
 0x10e   :  { %v294_v30 = vpop.f32.mrf.mxu0  ;;  %v407_v8 = vpop.f32.mrf.mxu1 }
 0x10f   :  { %3608 = vst [vmem:[#allocation44_spill] sm:$0xff] %v2768_v31  ;;  %3609 = vst [vmem:[#allocation45_spill] sm:$0xff] %v2771_v32  ;;  %v2773_v59 = vadd.f32 %v294_v30, %v170_v40  ;;  %v2776_v0 = vadd.f32 %v407_v8, %v2746_v58 }
 0x111   :  { %3610 = vst [vmem:[#allocation46_spill] sm:$0xff] %v2773_v59  ;;  %3611 = vst [vmem:[#allocation47_spill] sm:$0xff] %v2776_v0 }
 0x112   :  { %v298_v52 = vpop.f32.mrf.mxu0  ;;  %v411_v29 = vpop.f32.mrf.mxu1 }
 0x113   :  { %v2778_v46 = vadd.f32 %v298_v52, %v166_v7  ;;  %v2781_v36 = vadd.f32 %v411_v29, %v2744_v43 }
 0x114   :  { %v300_v37 = vpop.f32.mrf.mxu0  ;;  %v413_v34 = vpop.f32.mrf.mxu1 }
 0x115   :  { %3612 = vst [vmem:[#allocation48_spill] sm:$0xff] %v2778_v46  ;;  %3613 = vst [vmem:[#allocation49_spill] sm:$0xff] %v2781_v36  ;;  %v2783_v31 = vadd.f32 %v300_v37, %v170_v40  ;;  %v2786_v33 = vadd.f32 %v413_v34, %v2746_v58 }
 0x117   :  { %3614 = vst [vmem:[#allocation50_spill] sm:$0xff] %v2783_v31  ;;  %3615 = vst [vmem:[#allocation51_spill] sm:$0xff] %v2786_v33 }
 0x118   :  { %v304_v32 = vpop.f32.mrf.mxu0  ;;  %v417_v30 = vpop.f32.mrf.mxu1 }
 0x119   :  { %v2788_v59 = vadd.f32 %v304_v32, %v166_v7  ;;  %v2791_v8 = vadd.f32 %v417_v30, %v2744_v43 }
 0x11a   :  { %v306_v0 = vpop.f32.mrf.mxu0  ;;  %v419_v52 = vpop.f32.mrf.mxu1 }
 0x11b   :  { %3616 = vst [vmem:[#allocation52_spill] sm:$0xff] %v2788_v59  ;;  %3617 = vst [vmem:[#allocation53_spill] sm:$0xff] %v2791_v8  ;;  %v2793_v46 = vadd.f32 %v306_v0, %v170_v40  ;;  %v2796_v29 = vadd.f32 %v419_v52, %v2746_v58 }
 0x11d   :  { %3618 = vst [vmem:[#allocation54_spill] sm:$0xff] %v2793_v46  ;;  %3619 = vst [vmem:[#allocation55_spill] sm:$0xff] %v2796_v29 }
 0x11e   :  { %v310_v36 = vpop.f32.mrf.mxu0  ;;  %v423_v37 = vpop.f32.mrf.mxu1 }
 0x11f   :  { %v2798_v31 = vadd.f32 %v310_v36, %v166_v7  ;;  %v2801_v34 = vadd.f32 %v423_v37, %v2744_v43 }
 0x120   :  { %v312_v33 = vpop.f32.mrf.mxu0  ;;  %v425_v32 = vpop.f32.mrf.mxu1 }
 0x121   :  { %3620 = vst [vmem:[#allocation56_spill] sm:$0xff] %v2798_v31  ;;  %3621 = vst [vmem:[#allocation57_spill] sm:$0xff] %v2801_v34  ;;  %v2803_v59 = vadd.f32 %v312_v33, %v170_v40  ;;  %v2806_v30 = vadd.f32 %v425_v32, %v2746_v58  ;;  %v275_v33 = vadd.f32 %v2736_v55, %v166_v7 }
 0x122   :  { %v277_v32 = vadd.f32 %v2740_v4, %v170_v40 }
 0x123   :  { %3622 = vst [vmem:[#allocation58_spill] sm:$0xff] %v2803_v59  ;;  %3623 = vst [vmem:[#allocation59_spill] sm:$0xff] %v2806_v30 }
 0x124   :  { %v316_v8 = vpop.f32.mrf.mxu0  ;;  %v429_v0 = vpop.f32.mrf.mxu1 }
 0x125   :  { %v2808_v46 = vadd.f32 %v316_v8, %v166_v7  ;;  %v2811_v52 = vadd.f32 %v429_v0, %v2744_v43 }
 0x126   :  { %v318_v29 = vpop.f32.mrf.mxu0  ;;  %v431_v36 = vpop.f32.mrf.mxu1 }
 0x127   :  { %3624 = vst [vmem:[#allocation60_spill] sm:$0xff] %v2808_v46  ;;  %3625 = vst [vmem:[#allocation61_spill] sm:$0xff] %v2811_v52  ;;  %v2813_v31 = vadd.f32 %v318_v29, %v170_v40  ;;  %v2816_v37 = vadd.f32 %v431_v36, %v2746_v58  ;;  %v390_v29 = vadd.f32 %v2742_v47, %v2746_v58 }
 0x128   :  { %v388_v36 = vadd.f32 %v2738_v1, %v2744_v43 }
 0x129   :  { %3626 = vst [vmem:[#allocation62_spill] sm:$0xff] %v2813_v31  ;;  %3627 = vst [vmem:[#allocation63_spill] sm:$0xff] %v2816_v37 }
 0x12a   :  { %v500_v34 = vpop.f32.mrf.mxu0  ;;  %v571_v46 = vpop.f32.mrf.mxu1 }
 0x12b   :  { %v501_v30 = vadd.f32 %v500_v34, %v275_v33  ;;  %v572_v37 = vadd.f32 %v571_v46, %v388_v36  ;;  %v3628_v46 = vld [vmem:[#allocation16_spill] sm:$0xff]  ;;  %v3633_v36 = vld [vmem:[#allocation21_spill] sm:$0xff] }
 0x12c   :  { %v502_v59 = vpop.f32.mrf.mxu0  ;;  %v573_v52 = vpop.f32.mrf.mxu1 }
 0x12d   :  { %v1984_v35 = vmul.f32 -1.442695, %v501_v30  ;;  %v503_v8 = vadd.f32 %v502_v59, %v277_v32  ;;  %v574_v31 = vadd.f32 %v573_v52, %v390_v29  ;;  %v3632_v29 = vld [vmem:[#allocation20_spill] sm:$0xff] }
 0x12f   :  { %2100 = vpow2.f32 %v1984_v35  ;;  %v1985_v0 = vmul.f32 -1.442695, %v503_v8  ;;  %v1986_v7 = vmul.f32 -1.442695, %v574_v31  ;;  %v3630_v8 = vld [vmem:[#allocation18_spill] sm:$0xff] }
 0x131   :  { %2102 = vpow2.f32 %v1985_v0  ;;  %v3631_v0 = vld [vmem:[#allocation19_spill] sm:$0xff] }
 0x132   :  { %2104 = vpow2.f32 %v1986_v7  ;;  %v3634_v7 = vld [vmem:[#allocation22_spill] sm:$0xff] }
 0x13c   :  { %v2101_v55 = vpop.eup %2100 }
 0x13d   :  { %v579_v4 = vadd.f32 1.0, %v2101_v55  ;;  %v3635_v55 = vld [vmem:[#allocation23_spill] sm:$0xff] }
 0x13e   :  { %v2103_v40 = vpop.eup %2102 }
 0x13f   :  { %2106 = vrcp.f32 %v579_v4  ;;  %v585_v59 = vadd.f32 1.0, %v2103_v40  ;;  %v2105_v35 = vpop.eup %2104  ;;  %v3636_v4 = vld [vmem:[#allocation24_spill] sm:$0xff]  ;;  %v3637_v40 = vld [vmem:[#allocation25_spill] sm:$0xff] }
 0x140   :  { %2108 = vtanh.f32 %v572_v37  ;;  %v592_v32 = vadd.f32 1.0, %v2105_v35  ;;  %v3629_v37 = vld [vmem:[#allocation17_spill] sm:$0xff]  ;;  %v3639_v35 = vld [vmem:[#allocation27_spill] sm:$0xff] }
 0x141   :  { %2110 = vrcp.f32 %v585_v59  ;;  %v3638_v59 = vld [vmem:[#allocation26_spill] sm:$0xff] }
 0x142   :  { %2112 = vrcp.f32 %v592_v32  ;;  %v3643_v32 = vld [vmem:[#allocation31_spill] sm:$0xff] }
 0x14c   :  { %v2107_v34 = vpop.eup %2106 }
 0x14d   :  { %v2109_v30 = vpop.eup %2108 }
 0x14e   :  { %v2111_v33 = vpop.eup %2110  ;;  %v596_v58 = vmul.f32 %v2109_v30, %v2107_v34  ;;  %v3640_v34 = vld [vmem:[#allocation28_spill] sm:$0xff]  ;;  %v3641_v30 = vld [vmem:[#allocation29_spill] sm:$0xff] }
 0x14f   :  { %v595_v47 = vmul.f32 0.0, %v2111_v33  ;;  %v2113_v31 = vpop.eup %2112  ;;  %v3642_v33 = vld [vmem:[#allocation30_spill] sm:$0xff] }
 0x151   :  { %v2824_v52 = vadd.f32 %v596_v58, %v595_v47  ;;  %v3644_v47 = vld [vmem:[#allocation32_spill] sm:$0xff]  ;;  %v3645_v58 = vld [vmem:[#allocation33_spill] sm:$0xff] }
 0x153   :  { %2114 = vtanh.f32 %v2824_v52 }
 0x160   :  { %v2115_v43 = vpop.eup %2114 }
 0x161   :  { %v2827_v1 = vmul.f32 %v2115_v43, %v2113_v31  ;;  %v3646_v31 = vld [vmem:[#allocation34_spill] sm:$0xff]  ;;  %v3647_v43 = vmov 0.0  }
 0x163   :  { %666 = vmatmul.mubr.f32.vlgmr.msra.gmra.mxu0 %v2827_v1  ;;  %737 = vmatmul.mubr.f32.vlgmr.msra.gmra.mxu1 %v2827_v1 }
 0x164   :  { %769 = vmatpush1.msra.mxu0 %v2423_v38  ;;  %840 = vmatpush1.msra.mxu1 %v2425_v39 }
 0x165   :  { %770 = vmatprep.subr.mxu0 %v2429_v41  ;;  %841 = vmatprep.subr.mxu1 %v2431_v42 }
 0x166   :  { %771 = vmatpush1.msra.mxu0 %v2437_v44  ;;  %842 = vmatpush1.msra.mxu1 %v2439_v45 }
 0x167   :  { %772 = vmatprep.subr.mxu0 %v2445_v48  ;;  %843 = vmatprep.subr.mxu1 %v2447_v49 }
 0x168   :  { %773 = vmatpush1.msra.mxu0 %v2451_v50  ;;  %844 = vmatpush1.msra.mxu1 %v2453_v51 }
 0x169   :  { %774 = vmatprep.subr.mxu0 %v2459_v53  ;;  %845 = vmatprep.subr.mxu1 %v2461_v54 }
 0x16a   :  { %775 = vmatpush1.msra.mxu0 %v2468_v56  ;;  %846 = vmatpush1.msra.mxu1 %v2470_v57 }
 0x16b   :  { %776 = vmatprep.subr.mxu0 %v2479_v60  ;;  %847 = vmatprep.subr.mxu1 %v2481_v61 }
 0x16c   :  { %777 = vmatpush1.msra.mxu0 %v2485_v62  ;;  %848 = vmatpush1.msra.mxu1 %v2487_v63 }
 0x16d   :  { %778 = vmatprep.subr.mxu0 %v2493_v2  ;;  %849 = vmatprep.subr.mxu1 %v2495_v3 }
 0x16e   :  { %779 = vmatpush1.msra.mxu0 %v2504_v5  ;;  %850 = vmatpush1.msra.mxu1 %v2506_v6 }
 0x16f   :  { %780 = vmatprep.subr.mxu0 %v2516_v9  ;;  %851 = vmatprep.subr.mxu1 %v2518_v10 }
 0x170   :  { %781 = vmatpush1.msra.mxu0 %v2522_v11  ;;  %852 = vmatpush1.msra.mxu1 %v2524_v12 }
 0x171   :  { %782 = vmatprep.subr.mxu0 %v2528_v13  ;;  %853 = vmatprep.subr.mxu1 %v2530_v14 }
 0x172   :  { %783 = vmatpush1.msra.mxu0 %v2536_v15  ;;  %854 = vmatpush1.msra.mxu1 %v2538_v16 }
 0x173   :  { %784 = vmatprep.subr.mxu0 %v2544_v17  ;;  %855 = vmatprep.subr.mxu1 %v2546_v18 }
 0x174   :  { %785 = vmatpush1.msra.mxu0 %v2550_v19  ;;  %856 = vmatpush1.msra.mxu1 %v2552_v20 }
 0x175   :  { %786 = vmatprep.subr.mxu0 %v2558_v21  ;;  %857 = vmatprep.subr.mxu1 %v2560_v22 }
 0x176   :  { %787 = vmatpush1.msra.mxu0 %v2566_v23  ;;  %858 = vmatpush1.msra.mxu1 %v2568_v24 }
 0x177   :  { %788 = vmatprep.subr.mxu0 %v2574_v25  ;;  %859 = vmatprep.subr.mxu1 %v2576_v26 }
 0x178   :  { %789 = vmatpush1.msra.mxu0 %v2580_v27  ;;  %860 = vmatpush1.msra.mxu1 %v2582_v28 }
 0x179   :  { %790 = vmatprep.subr.mxu0 %v3628_v46  ;;  %861 = vmatprep.subr.mxu1 %v3629_v37 }
 0x17a   :  { %791 = vmatpush1.msra.mxu0 %v3630_v8  ;;  %862 = vmatpush1.msra.mxu1 %v3631_v0 }
 0x17b   :  { %792 = vmatprep.subr.mxu0 %v3632_v29  ;;  %863 = vmatprep.subr.mxu1 %v3633_v36  ;;  %v3653_v36 = vld [vmem:[#allocation39_spill] sm:$0xff]  ;;  %v3654_v29 = vld [vmem:[#allocation37_spill] sm:$0xff] }
 0x17c   :  { %793 = vmatpush1.msra.mxu0 %v3634_v7  ;;  %864 = vmatpush1.msra.mxu1 %v3635_v55 }
 0x17d   :  { %794 = vmatprep.subr.mxu0 %v3636_v4  ;;  %865 = vmatprep.subr.mxu1 %v3637_v40  ;;  %v3648_v40 = vld [vmem:[#allocation35_spill] sm:$0xff] }
 0x17e   :  { %795 = vmatpush1.msra.mxu0 %v3638_v59  ;;  %866 = vmatpush1.msra.mxu1 %v3639_v35  ;;  %v3649_v35 = vld [vmem:[#allocation12_spill] sm:$0xff] }
 0x17f   :  { %796 = vmatprep.subr.mxu0 %v3640_v34  ;;  %867 = vmatprep.subr.mxu1 %v3641_v30  ;;  %v3650_v34 = vld [vmem:[#allocation13_spill] sm:$0xff] }
 0x180   :  { %797 = vmatpush1.msra.mxu0 %v3642_v33  ;;  %868 = vmatpush1.msra.mxu1 %v3643_v32  ;;  %v3651_v33 = vld [vmem:[#allocation36_spill] sm:$0xff] }
 0x181   :  { %798 = vmatprep.subr.mxu0 %v3644_v47  ;;  %869 = vmatprep.subr.mxu1 %v3645_v58  ;;  %v3652_v47 = vld [vmem:[#allocation38_spill] sm:$0xff] }
 0x182   :  { %799 = vmatpush1.msra.mxu0 %v3646_v31  ;;  %832 = vmatprep.mubr.f32.mxu0 %v3647_v43 }
 0x183   :  { %870 = vmatpush1.msra.mxu1 %v3648_v40  ;;  %903 = vmatprep.mubr.f32.mxu1 %v3647_v43 }
 0x184   :  { %935 = vmatprep.subr.mxu0 %v3649_v35  ;;  %1006 = vmatprep.subr.mxu1 %v3650_v34 }
 0x223   :  { %v667_v30 = vpop.f32.mrf.mxu0  ;;  %v738_v58 = vpop.f32.mrf.mxu1 }
 0x224   :  { %v668_v59 = vadd.f32 %v667_v30, %v3651_v33  ;;  %v739_v43 = vadd.f32 %v738_v58, %v3654_v29  ;;  %v3677_v58 = vld [vmem:[#allocation42_spill] sm:$0xff] }
 0x225   :  { %v669_v32 = vpop.f32.mrf.mxu0  ;;  %v740_v7 = vpop.f32.mrf.mxu1 }
 0x226   :  { %v1987_v4 = vmul.f32 -1.442695, %v668_v59  ;;  %v670_v55 = vadd.f32 %v669_v32, %v3652_v47  ;;  %v741_v40 = vadd.f32 %v740_v7, %v3653_v36 }
 0x228   :  { %2116 = vpow2.f32 %v1987_v4  ;;  %v1988_v31 = vmul.f32 -1.442695, %v670_v55  ;;  %v1989_v0 = vmul.f32 -1.442695, %v741_v40 }
 0x22a   :  { %2118 = vpow2.f32 %v1988_v31 }
 0x22b   :  { %2120 = vtanh.f32 %v739_v43 }
 0x22c   :  { %2122 = vpow2.f32 %v1989_v0  ;;  %v600_v0 = vmax.f32 %v2827_v1, 0.0 }
 0x235   :  { %v2117_v35 = vpop.eup %2116 }
 0x236   :  { %v746_v8 = vadd.f32 1.0, %v2117_v35 }
 0x237   :  { %v2119_v34 = vpop.eup %2118 }
 0x238   :  { %2124 = vrcp.f32 %v746_v8  ;;  %v752_v30 = vadd.f32 1.0, %v2119_v34  ;;  %v2121_v59 = vpop.eup %2120 }
 0x239   :  { %v2123_v33 = vpop.eup %2122 }
 0x23a   :  { %2126 = vrcp.f32 %v752_v30  ;;  %v759_v47 = vadd.f32 1.0, %v2123_v33 }
 0x23c   :  { %2128 = vrcp.f32 %v759_v47 }
 0x245   :  { %v2125_v4 = vpop.eup %2124 }
 0x246   :  { %v763_v32 = vmul.f32 %v2125_v4, %v2121_v59  ;;  %v3678_v59 = vld [vmem:[#allocation43_spill] sm:$0xff]  ;;  %v3679_v4 = vld [vmem:[#allocation41_spill] sm:$0xff] }
 0x247   :  { %v2127_v55 = vpop.eup %2126 }
 0x248   :  { %v762_v31 = vmul.f32 %v2127_v55, %v2824_v52 }
 0x249   :  { %v2129_v29 = vpop.eup %2128 }
 0x24a   :  { %v2902_v36 = vadd.f32 %v763_v32, %v762_v31 }
 0x24c   :  { %2130 = vtanh.f32 %v2902_v36 }
 0x259   :  { %v2131_v7 = vpop.eup %2130 }
 0x25a   :  { %v766_v8 = vmul.f32 %v2131_v7, %v2129_v29 }
 0x25c   :  { %v2906_v40 = vmax.f32 %v600_v0, %v766_v8  ;;  %833 = vmatmul.mubr.f32.vlgmr.msra.gmra.mxu0 %v766_v8  ;;  %904 = vmatmul.mubr.f32.vlgmr.msra.gmra.mxu1 %v766_v8 }
 0x25d   :  { %936 = vmatpush1.msra.mxu0 %v2423_v38  ;;  %1007 = vmatpush1.msra.mxu1 %v2425_v39  ;;  %v3655_v38 = vld [vmem:[#allocation18_spill] sm:$0xff]  ;;  %v3656_v39 = vld [vmem:[#allocation19_spill] sm:$0xff] }
 0x25e   :  { %937 = vmatprep.subr.mxu0 %v2429_v41  ;;  %1008 = vmatprep.subr.mxu1 %v2431_v42  ;;  %v3657_v41 = vld [vmem:[#allocation20_spill] sm:$0xff]  ;;  %v3658_v42 = vld [vmem:[#allocation21_spill] sm:$0xff] }
 0x25f   :  { %938 = vmatpush1.msra.mxu0 %v2437_v44  ;;  %1009 = vmatpush1.msra.mxu1 %v2439_v45  ;;  %v3659_v44 = vld [vmem:[#allocation22_spill] sm:$0xff]  ;;  %v3660_v45 = vld [vmem:[#allocation23_spill] sm:$0xff] }
 0x260   :  { %939 = vmatprep.subr.mxu0 %v2445_v48  ;;  %1010 = vmatprep.subr.mxu1 %v2447_v49  ;;  %v3661_v48 = vld [vmem:[#allocation24_spill] sm:$0xff]  ;;  %v3662_v49 = vld [vmem:[#allocation25_spill] sm:$0xff] }
 0x261   :  { %940 = vmatpush1.msra.mxu0 %v2451_v50  ;;  %1011 = vmatpush1.msra.mxu1 %v2453_v51  ;;  %v3663_v50 = vld [vmem:[#allocation26_spill] sm:$0xff]  ;;  %v3664_v51 = vld [vmem:[#allocation27_spill] sm:$0xff] }
 0x262   :  { %941 = vmatprep.subr.mxu0 %v2459_v53  ;;  %1012 = vmatprep.subr.mxu1 %v2461_v54  ;;  %v3665_v53 = vld [vmem:[#allocation28_spill] sm:$0xff]  ;;  %v3666_v54 = vld [vmem:[#allocation29_spill] sm:$0xff] }
 0x263   :  { %942 = vmatpush1.msra.mxu0 %v2468_v56  ;;  %1013 = vmatpush1.msra.mxu1 %v2470_v57  ;;  %v3667_v56 = vld [vmem:[#allocation30_spill] sm:$0xff]  ;;  %v3668_v57 = vld [vmem:[#allocation31_spill] sm:$0xff] }
 0x264   :  { %943 = vmatprep.subr.mxu0 %v2479_v60  ;;  %1014 = vmatprep.subr.mxu1 %v2481_v61  ;;  %v3669_v60 = vld [vmem:[#allocation32_spill] sm:$0xff]  ;;  %v3670_v61 = vld [vmem:[#allocation33_spill] sm:$0xff] }
 0x265   :  { %944 = vmatpush1.msra.mxu0 %v2485_v62  ;;  %1015 = vmatpush1.msra.mxu1 %v2487_v63  ;;  %v3671_v62 = vld [vmem:[#allocation34_spill] sm:$0xff]  ;;  %v3672_v63 = vmov 0.0  }
 0x266   :  { %945 = vmatprep.subr.mxu0 %v2493_v2  ;;  %1016 = vmatprep.subr.mxu1 %v2495_v3  ;;  %v3673_v2 = vld [vmem:[#allocation35_spill] sm:$0xff] }
 0x267   :  { %946 = vmatpush1.msra.mxu0 %v2504_v5  ;;  %1017 = vmatpush1.msra.mxu1 %v2506_v6  ;;  %v2972_v3 = vld [vmem:[#allocation5 + $0x2e8] sm:$0xff]  ;;  %v2975_v5 = vld [vmem:[#allocation5 + $0x2f8] sm:$0xff] }
 0x268   :  { %947 = vmatprep.subr.mxu0 %v2516_v9  ;;  %1018 = vmatprep.subr.mxu1 %v2518_v10  ;;  %3674 = vst [vmem:[#allocation16_spill] sm:$0xff] %v2972_v3  ;;  %3675 = vst [vmem:[#allocation17_spill] sm:$0xff] %v2975_v5  ;;  %v3676_v9 = vld [vmem:[#allocation40_spill] sm:$0xff] }
 0x269   :  { %948 = vmatpush1.msra.mxu0 %v2522_v11  ;;  %1019 = vmatpush1.msra.mxu1 %v2524_v12 }
 0x26a   :  { %949 = vmatprep.subr.mxu0 %v2528_v13  ;;  %1020 = vmatprep.subr.mxu1 %v2530_v14 }
 0x26b   :  { %950 = vmatpush1.msra.mxu0 %v2536_v15  ;;  %1021 = vmatpush1.msra.mxu1 %v2538_v16 }
 0x26c   :  { %951 = vmatprep.subr.mxu0 %v2544_v17  ;;  %1022 = vmatprep.subr.mxu1 %v2546_v18 }
 0x26d   :  { %952 = vmatpush1.msra.mxu0 %v2550_v19  ;;  %1023 = vmatpush1.msra.mxu1 %v2552_v20 }
 0x26e   :  { %953 = vmatprep.subr.mxu0 %v2558_v21  ;;  %1024 = vmatprep.subr.mxu1 %v2560_v22 }
 0x26f   :  { %954 = vmatpush1.msra.mxu0 %v2566_v23  ;;  %1025 = vmatpush1.msra.mxu1 %v2568_v24 }
 0x270   :  { %955 = vmatprep.subr.mxu0 %v2574_v25  ;;  %1026 = vmatprep.subr.mxu1 %v2576_v26 }
 0x271   :  { %956 = vmatpush1.msra.mxu0 %v2580_v27  ;;  %1027 = vmatpush1.msra.mxu1 %v2582_v28 }
 0x272   :  { %957 = vmatprep.subr.mxu0 %v3628_v46  ;;  %1028 = vmatprep.subr.mxu1 %v3629_v37 }
 0x273   :  { %958 = vmatpush1.msra.mxu0 %v3655_v38  ;;  %1029 = vmatpush1.msra.mxu1 %v3656_v39 }
 0x274   :  { %959 = vmatprep.subr.mxu0 %v3657_v41  ;;  %1030 = vmatprep.subr.mxu1 %v3658_v42 }
 0x275   :  { %960 = vmatpush1.msra.mxu0 %v3659_v44  ;;  %1031 = vmatpush1.msra.mxu1 %v3660_v45 }
 0x276   :  { %961 = vmatprep.subr.mxu0 %v3661_v48  ;;  %1032 = vmatprep.subr.mxu1 %v3662_v49 }
 0x277   :  { %962 = vmatpush1.msra.mxu0 %v3663_v50  ;;  %1033 = vmatpush1.msra.mxu1 %v3664_v51 }
 0x278   :  { %963 = vmatprep.subr.mxu0 %v3665_v53  ;;  %1034 = vmatprep.subr.mxu1 %v3666_v54 }
 0x279   :  { %964 = vmatpush1.msra.mxu0 %v3667_v56  ;;  %1035 = vmatpush1.msra.mxu1 %v3668_v57 }
 0x27a   :  { %965 = vmatprep.subr.mxu0 %v3669_v60  ;;  %1036 = vmatprep.subr.mxu1 %v3670_v61 }
 0x27b   :  { %966 = vmatpush1.msra.mxu0 %v3671_v62  ;;  %999 = vmatprep.mubr.f32.mxu0 %v3672_v63 }
 0x27c   :  { %1037 = vmatpush1.msra.mxu1 %v3673_v2  ;;  %1070 = vmatprep.mubr.f32.mxu1 %v3672_v63 }
 0x27d   :  { %1102 = vmatprep.subr.mxu0 %v2972_v3  ;;  %1173 = vmatprep.subr.mxu1 %v2975_v5 }
 0x31c   :  { %v834_v6 = vpop.f32.mrf.mxu0  ;;  %v905_v35 = vpop.f32.mrf.mxu1 }
 0x31d   :  { %v835_v10 = vadd.f32 %v834_v6, %v3676_v9  ;;  %v906_v32 = vadd.f32 %v905_v35, %v3679_v4  ;;  %v3001_v4 = vld [vmem:[#allocation5 + $0x2d8] sm:$0xff] }
 0x31e   :  { %v836_v52 = vpop.f32.mrf.mxu0  ;;  %v907_v30 = vpop.f32.mrf.mxu1 }
 0x31f   :  { %v1990_v1 = vmul.f32 -1.442695, %v835_v10  ;;  %v837_v43 = vadd.f32 %v836_v52, %v3677_v58  ;;  %v908_v33 = vadd.f32 %v907_v30, %v3678_v59  ;;  %v2992_v59 = vld [vmem:[#allocation5 + $0x2e0] sm:$0xff]  ;;  %v3049_v30 = vld [vmem:[#allocation5 + $0x258] sm:$0xff] }
 0x321   :  { %2132 = vpow2.f32 %v1990_v1  ;;  %v1991_v34 = vmul.f32 -1.442695, %v837_v43  ;;  %v1992_v55 = vmul.f32 -1.442695, %v908_v33  ;;  %v2998_v33 = vld [vmem:[#allocation5 + $0x2c8] sm:$0xff] }
 0x323   :  { %2134 = vpow2.f32 %v1991_v34 }
 0x324   :  { %2136 = vtanh.f32 %v906_v32  ;;  %v3004_v32 = vld [vmem:[#allocation5 + $0x2c0] sm:$0xff] }
 0x325   :  { %2138 = vpow2.f32 %v1992_v55  ;;  %v3007_v55 = vld [vmem:[#allocation5 + $0x2d0] sm:$0xff] }
 0x32e   :  { %v2133_v47 = vpop.eup %2132 }
 0x32f   :  { %v913_v31 = vadd.f32 1.0, %v2133_v47  ;;  %v3010_v47 = vld [vmem:[#allocation5 + $0x2a8] sm:$0xff] }
 0x330   :  { %v2135_v29 = vpop.eup %2134 }
 0x331   :  { %2140 = vrcp.f32 %v913_v31  ;;  %v919_v7 = vadd.f32 1.0, %v2135_v29  ;;  %v2137_v0 = vpop.eup %2136  ;;  %v3013_v31 = vld [vmem:[#allocation5 + $0x2b8] sm:$0xff]  ;;  %v3016_v29 = vld [vmem:[#allocation5 + $0x2a0] sm:$0xff] }
 0x332   :  { %v2139_v8 = vpop.eup %2138 }
 0x333   :  { %2142 = vrcp.f32 %v919_v7  ;;  %v926_v52 = vadd.f32 1.0, %v2139_v8  ;;  %v3019_v7 = vld [vmem:[#allocation5 + $0x2b0] sm:$0xff]  ;;  %v3025_v8 = vld [vmem:[#allocation5 + $0x298] sm:$0xff] }
 0x335   :  { %2144 = vrcp.f32 %v926_v52  ;;  %v3037_v52 = vld [vmem:[#allocation5 + $0x278] sm:$0xff] }
 0x336   :  { %3681 = vst [vmem:[#allocation13_spill] sm:$0xff] %v3037_v52 }
 0x33e   :  { %v2141_v6 = vpop.eup %2140 }
 0x33f   :  { %v930_v9 = vmul.f32 %v2141_v6, %v2137_v0  ;;  %v3022_v0 = vld [vmem:[#allocation5 + $0x288] sm:$0xff]  ;;  %v3028_v6 = vld [vmem:[#allocation5 + $0x280] sm:$0xff] }
 0x340   :  { %v2143_v10 = vpop.eup %2142 }
 0x341   :  { %v929_v1 = vmul.f32 %v2143_v10, %v2902_v36  ;;  %v2995_v36 = vld [vmem:[#allocation5 + $0x2f0] sm:$0xff]  ;;  %v3034_v10 = vld [vmem:[#allocation5 + $0x268] sm:$0xff] }
 0x342   :  { %v2145_v43 = vpop.eup %2144  ;;  %3680 = vst [vmem:[#allocation12_spill] sm:$0xff] %v3034_v10 }
 0x343   :  { %v2983_v58 = vadd.f32 %v930_v9, %v929_v1  ;;  %v3031_v9 = vld [vmem:[#allocation5 + $0x290] sm:$0xff]  ;;  %v3040_v1 = vld [vmem:[#allocation5 + $0x260] sm:$0xff] }
 0x344   :  { %3682 = vst [vmem:[#allocation36_spill] sm:$0xff] %v3040_v1 }
 0x345   :  { %2146 = vtanh.f32 %v2983_v58 }
 0x352   :  { %v2147_v35 = vpop.eup %2146 }
 0x353   :  { %v2986_v34 = vmul.f32 %v2147_v35, %v2145_v43  ;;  %v3043_v43 = vld [vmem:[#allocation5 + $0x270] sm:$0xff]  ;;  %v3046_v35 = vld [vmem:[#allocation5 + $0x248] sm:$0xff] }
 0x354   :  { %3683 = vst [vmem:[#allocation38_spill] sm:$0xff] %v3043_v43 }
 0x355   :  { %1000 = vmatmul.mubr.f32.vlgmr.msra.gmra.mxu0 %v2986_v34  ;;  %1071 = vmatmul.mubr.f32.vlgmr.msra.gmra.mxu1 %v2986_v34 }
 0x356   :  { %1103 = vmatpush1.msra.mxu0 %v2992_v59  ;;  %1174 = vmatpush1.msra.mxu1 %v2995_v36 }
 0x357   :  { %1104 = vmatprep.subr.mxu0 %v2998_v33  ;;  %1175 = vmatprep.subr.mxu1 %v3001_v4 }
 0x358   :  { %1105 = vmatpush1.msra.mxu0 %v3004_v32  ;;  %1176 = vmatpush1.msra.mxu1 %v3007_v55 }
 0x359   :  { %1106 = vmatprep.subr.mxu0 %v3010_v47  ;;  %1177 = vmatprep.subr.mxu1 %v3013_v31 }
 0x35a   :  { %1107 = vmatpush1.msra.mxu0 %v3016_v29  ;;  %1178 = vmatpush1.msra.mxu1 %v3019_v7 }
 0x35b   :  { %1108 = vmatprep.subr.mxu0 %v3022_v0  ;;  %1179 = vmatprep.subr.mxu1 %v3025_v8 }
 0x35c   :  { %1109 = vmatpush1.msra.mxu0 %v3028_v6  ;;  %1180 = vmatpush1.msra.mxu1 %v3031_v9 }
 0x35d   :  { %1110 = vmatprep.subr.mxu0 %v3034_v10  ;;  %1181 = vmatprep.subr.mxu1 %v3037_v52  ;;  %v3052_v10 = vld [vmem:[#allocation5 + $0x240] sm:$0xff]  ;;  %v3055_v52 = vld [vmem:[#allocation5 + $0x250] sm:$0xff] }
 0x35e   :  { %1111 = vmatpush1.msra.mxu0 %v3040_v1  ;;  %1182 = vmatpush1.msra.mxu1 %v3043_v43  ;;  %v3058_v1 = vld [vmem:[#allocation5 + $0x228] sm:$0xff]  ;;  %v3061_v43 = vld [vmem:[#allocation5 + $0x238] sm:$0xff] }
 0x35f   :  { %1112 = vmatprep.subr.mxu0 %v3046_v35  ;;  %1183 = vmatprep.subr.mxu1 %v3049_v30 }
 0x360   :  { %1113 = vmatpush1.msra.mxu0 %v3052_v10  ;;  %1184 = vmatpush1.msra.mxu1 %v3055_v52 }
 0x361   :  { %1114 = vmatprep.subr.mxu0 %v3058_v1  ;;  %1185 = vmatprep.subr.mxu1 %v3061_v43 }
 0x362   :  { %1115 = vmatpush1.msra.mxu0 %v2522_v11  ;;  %1186 = vmatpush1.msra.mxu1 %v2524_v12  ;;  %v3684_v12 = vld [vmem:[#allocation44_spill] sm:$0xff] }
 0x363   :  { %1116 = vmatprep.subr.mxu0 %v2528_v13  ;;  %1187 = vmatprep.subr.mxu1 %v2530_v14 }
 0x364   :  { %1117 = vmatpush1.msra.mxu0 %v2536_v15  ;;  %1188 = vmatpush1.msra.mxu1 %v2538_v16  ;;  %v3685_v16 = vld [vmem:[#allocation46_spill] sm:$0xff] }
 0x365   :  { %1118 = vmatprep.subr.mxu0 %v2544_v17  ;;  %1189 = vmatprep.subr.mxu1 %v2546_v18 }
 0x366   :  { %1119 = vmatpush1.msra.mxu0 %v2550_v19  ;;  %1190 = vmatpush1.msra.mxu1 %v2552_v20 }
 0x367   :  { %1120 = vmatprep.subr.mxu0 %v2558_v21  ;;  %1191 = vmatprep.subr.mxu1 %v2560_v22  ;;  %v3686_v21 = vld [vmem:[#allocation47_spill] sm:$0xff] }
 0x368   :  { %1121 = vmatpush1.msra.mxu0 %v2566_v23  ;;  %1192 = vmatpush1.msra.mxu1 %v2568_v24  ;;  %v3687_v23 = vld [vmem:[#allocation45_spill] sm:$0xff] }
 0x369   :  { %1122 = vmatprep.subr.mxu0 %v2574_v25  ;;  %1193 = vmatprep.subr.mxu1 %v2576_v26 }
 0x36a   :  { %1123 = vmatpush1.msra.mxu0 %v2580_v27  ;;  %1194 = vmatpush1.msra.mxu1 %v2582_v28 }
 0x36b   :  { %1124 = vmatprep.subr.mxu0 %v3628_v46  ;;  %1195 = vmatprep.subr.mxu1 %v3629_v37 }
 0x36c   :  { %1125 = vmatpush1.msra.mxu0 %v3655_v38  ;;  %1196 = vmatpush1.msra.mxu1 %v3656_v39 }
 0x36d   :  { %1126 = vmatprep.subr.mxu0 %v3657_v41  ;;  %1197 = vmatprep.subr.mxu1 %v3658_v42 }
 0x36e   :  { %1127 = vmatpush1.msra.mxu0 %v3659_v44  ;;  %1198 = vmatpush1.msra.mxu1 %v3660_v45 }
 0x36f   :  { %1128 = vmatprep.subr.mxu0 %v3661_v48  ;;  %1199 = vmatprep.subr.mxu1 %v3662_v49 }
 0x370   :  { %1129 = vmatpush1.msra.mxu0 %v3663_v50  ;;  %1200 = vmatpush1.msra.mxu1 %v3664_v51 }
 0x371   :  { %1130 = vmatprep.subr.mxu0 %v3665_v53  ;;  %1201 = vmatprep.subr.mxu1 %v3666_v54  ;;  %v3688_v53 = vmax.f32 %v2906_v40, %v2986_v34  ;;  %v3689_v40 = vld [vmem:[#allocation12_spill] sm:$0xff]  ;;  %v3155_v34 = vld [vmem:[#allocation5 + $0x200] sm:$0xff] }
 0x372   :  { %1131 = vmatpush1.msra.mxu0 %v3667_v56  ;;  %1202 = vmatpush1.msra.mxu1 %v3668_v57  ;;  %v3690_v56 = vld [vmem:[#allocation13_spill] sm:$0xff]  ;;  %v3691_v57 = vld [vmem:[#allocation36_spill] sm:$0xff] }
 0x373   :  { %1132 = vmatprep.subr.mxu0 %v3669_v60  ;;  %1203 = vmatprep.subr.mxu1 %v3670_v61  ;;  %v3692_v60 = vld [vmem:[#allocation38_spill] sm:$0xff] }
 0x374   :  { %1133 = vmatpush1.msra.mxu0 %v3671_v62  ;;  %1166 = vmatprep.mubr.f32.mxu0 %v3672_v63  ;;  %v3143_v61 = vld [vmem:[#allocation5 + $0x220] sm:$0xff]  ;;  %v3146_v62 = vld [vmem:[#allocation5 + $0x230] sm:$0xff] }
 0x375   :  { %1204 = vmatpush1.msra.mxu1 %v3673_v2  ;;  %1237 = vmatprep.mubr.f32.mxu1 %v3672_v63  ;;  %v3149_v2 = vld [vmem:[#allocation5 + $0x208] sm:$0xff] }
 0x376   :  { %1269 = vmatprep.subr.mxu0 %v2972_v3  ;;  %1340 = vmatprep.subr.mxu1 %v2975_v5 }
 0x415   :  { %v1001_v11 = vpop.f32.mrf.mxu0  ;;  %v1072_v18 = vpop.f32.mrf.mxu1 }
 0x416   :  { %v1002_v13 = vadd.f32 %v1001_v11, %v3684_v12  ;;  %v1073_v24 = vadd.f32 %v1072_v18, %v3687_v23  ;;  %v3158_v11 = vld [vmem:[#allocation5 + $0x210] sm:$0xff]  ;;  %v3161_v12 = vld [vmem:[#allocation5 + $0x1e8] sm:$0xff]  ;;  %v3179_v18 = vld [vmem:[#allocation5 + $0x1c0] sm:$0xff] }
 0x417   :  { %v1003_v14 = vpop.f32.mrf.mxu0  ;;  %v1074_v20 = vpop.f32.mrf.mxu1  ;;  %v3194_v23 = vld [vmem:[#allocation5 + $0x1b0] sm:$0xff] }
 0x418   :  { %v1993_v15 = vmul.f32 -1.442695, %v1002_v13  ;;  %v1004_v17 = vadd.f32 %v1003_v14, %v3685_v16  ;;  %v1075_v22 = vadd.f32 %v1074_v20, %v3686_v21  ;;  %v3164_v13 = vld [vmem:[#allocation5 + $0x1f8] sm:$0xff]  ;;  %v3167_v14 = vld [vmem:[#allocation5 + $0x1e0] sm:$0xff]  ;;  %v3173_v16 = vld [vmem:[#allocation5 + $0x1c8] sm:$0xff] }
 0x419   :  { %v3185_v20 = vld [vmem:[#allocation5 + $0x1a8] sm:$0xff]  ;;  %v3188_v21 = vld [vmem:[#allocation5 + $0x1b8] sm:$0xff] }
 0x41a   :  { %2148 = vpow2.f32 %v1993_v15  ;;  %v1994_v19 = vmul.f32 -1.442695, %v1004_v17  ;;  %v1995_v25 = vmul.f32 -1.442695, %v1075_v22  ;;  %v3170_v15 = vld [vmem:[#allocation5 + $0x1f0] sm:$0xff]  ;;  %v3176_v17 = vld [vmem:[#allocation5 + $0x1d8] sm:$0xff] }
 0x41b   :  { %v3191_v22 = vld [vmem:[#allocation5 + $0x1a0] sm:$0xff] }
 0x41c   :  { %2150 = vpow2.f32 %v1994_v19  ;;  %v3182_v19 = vld [vmem:[#allocation5 + $0x1d0] sm:$0xff] }
 0x41d   :  { %2152 = vtanh.f32 %v1073_v24  ;;  %v3197_v24 = vld [vmem:[#allocation5 + $0x188] sm:$0xff] }
 0x41e   :  { %2154 = vpow2.f32 %v1995_v25  ;;  %v3200_v25 = vld [vmem:[#allocation5 + $0x198] sm:$0xff] }
 0x41f   :  { %3693 = vst [vmem:[#allocation39_spill] sm:$0xff] %v3200_v25 }
 0x427   :  { %v2149_v26 = vpop.eup %2148 }
 0x428   :  { %v1080_v27 = vadd.f32 1.0, %v2149_v26  ;;  %v3203_v26 = vld [vmem:[#allocation5 + $0x180] sm:$0xff] }
 0x429   :  { %v2151_v28 = vpop.eup %2150  ;;  %3694 = vst [vmem:[#allocation37_spill] sm:$0xff] %v3203_v26 }
 0x42a   :  { %2156 = vrcp.f32 %v1080_v27  ;;  %v1086_v46 = vadd.f32 1.0, %v2151_v28  ;;  %v2153_v37 = vpop.eup %2152  ;;  %v3206_v27 = vld [vmem:[#allocation5 + $0x190] sm:$0xff]  ;;  %v3209_v28 = vld [vmem:[#allocation5 + $0x168] sm:$0xff] }
 0x42b   :  { %v2155_v38 = vpop.eup %2154  ;;  %3695 = vst [vmem:[#allocation18_spill] sm:$0xff] %v3206_v27  ;;  %3696 = vst [vmem:[#allocation19_spill] sm:$0xff] %v3209_v28 }
 0x42c   :  { %2158 = vrcp.f32 %v1086_v46  ;;  %v1093_v44 = vadd.f32 1.0, %v2155_v38  ;;  %v3212_v46 = vld [vmem:[#allocation5 + $0x178] sm:$0xff]  ;;  %v3218_v38 = vld [vmem:[#allocation5 + $0x170] sm:$0xff] }
 0x42d   :  { %3697 = vst [vmem:[#allocation20_spill] sm:$0xff] %v3212_v46  ;;  %3699 = vst [vmem:[#allocation22_spill] sm:$0xff] %v3218_v38 }
 0x42e   :  { %2160 = vrcp.f32 %v1093_v44  ;;  %v3230_v44 = vld [vmem:[#allocation5 + $0x150] sm:$0xff] }
 0x42f   :  { %3703 = vst [vmem:[#allocation26_spill] sm:$0xff] %v3230_v44 }
 0x437   :  { %v2157_v39 = vpop.eup %2156 }
 0x438   :  { %v1097_v41 = vmul.f32 %v2157_v39, %v2153_v37  ;;  %v3215_v37 = vld [vmem:[#allocation5 + $0x160] sm:$0xff]  ;;  %v3221_v39 = vld [vmem:[#allocation5 + $0x148] sm:$0xff] }
 0x439   :  { %v2159_v42 = vpop.eup %2158  ;;  %3698 = vst [vmem:[#allocation21_spill] sm:$0xff] %v3215_v37  ;;  %3700 = vst [vmem:[#allocation23_spill] sm:$0xff] %v3221_v39 }
 0x43a   :  { %v1096_v45 = vmul.f32 %v2159_v42, %v2983_v58  ;;  %v3152_v58 = vld [vmem:[#allocation5 + $0x218] sm:$0xff]  ;;  %v3227_v42 = vld [vmem:[#allocation5 + $0x140] sm:$0xff] }
 0x43b   :  { %v2161_v49 = vpop.eup %2160  ;;  %3702 = vst [vmem:[#allocation25_spill] sm:$0xff] %v3227_v42 }
 0x43c   :  { %v3111_v48 = vadd.f32 %v1097_v41, %v1096_v45  ;;  %v3224_v41 = vld [vmem:[#allocation5 + $0x158] sm:$0xff]  ;;  %v3233_v45 = vld [vmem:[#allocation5 + $0x128] sm:$0xff] }
 0x43d   :  { %3701 = vst [vmem:[#allocation24_spill] sm:$0xff] %v3224_v41  ;;  %3704 = vst [vmem:[#allocation27_spill] sm:$0xff] %v3233_v45 }
 0x43e   :  { %2162 = vtanh.f32 %v3111_v48 }
 0x44b   :  { %v2163_v50 = vpop.eup %2162 }
 0x44c   :  { %v1100_v51 = vmul.f32 %v2163_v50, %v2161_v49  ;;  %v3236_v49 = vld [vmem:[#allocation5 + $0x138] sm:$0xff]  ;;  %v3239_v50 = vld [vmem:[#allocation5 + $0x120] sm:$0xff] }
 0x44d   :  { %3705 = vst [vmem:[#allocation28_spill] sm:$0xff] %v3236_v49  ;;  %3706 = vst [vmem:[#allocation29_spill] sm:$0xff] %v3239_v50 }
 0x44e   :  { %v3117_v54 = vmax.f32 %v3688_v53, %v1100_v51  ;;  %1167 = vmatmul.mubr.f32.vlgmr.msra.gmra.mxu0 %v1100_v51  ;;  %1238 = vmatmul.mubr.f32.vlgmr.msra.gmra.mxu1 %v1100_v51  ;;  %v3242_v51 = vld [vmem:[#allocation5 + $0x130] sm:$0xff]  ;;  %v3245_v53 = vld [vmem:[#allocation5 + $0x108] sm:$0xff] }
 0x44f   :  { %1270 = vmatpush1.msra.mxu0 %v2992_v59  ;;  %1341 = vmatpush1.msra.mxu1 %v2995_v36  ;;  %3707 = vst [vmem:[#allocation30_spill] sm:$0xff] %v3242_v51  ;;  %3708 = vst [vmem:[#allocation31_spill] sm:$0xff] %v3245_v53 }
 0x450   :  { %1271 = vmatprep.subr.mxu0 %v2998_v33  ;;  %1342 = vmatprep.subr.mxu1 %v3001_v4 }
 0x451   :  { %1272 = vmatpush1.msra.mxu0 %v3004_v32  ;;  %1343 = vmatpush1.msra.mxu1 %v3007_v55 }
 0x452   :  { %1273 = vmatprep.subr.mxu0 %v3010_v47  ;;  %1344 = vmatprep.subr.mxu1 %v3013_v31 }
 0x453   :  { %1274 = vmatpush1.msra.mxu0 %v3016_v29  ;;  %1345 = vmatpush1.msra.mxu1 %v3019_v7 }
 0x454   :  { %1275 = vmatprep.subr.mxu0 %v3022_v0  ;;  %1346 = vmatprep.subr.mxu1 %v3025_v8 }
 0x455   :  { %1276 = vmatpush1.msra.mxu0 %v3028_v6  ;;  %1347 = vmatpush1.msra.mxu1 %v3031_v9 }
 0x456   :  { %1277 = vmatprep.subr.mxu0 %v3689_v40  ;;  %1348 = vmatprep.subr.mxu1 %v3690_v56 }
 0x457   :  { %1278 = vmatpush1.msra.mxu0 %v3691_v57  ;;  %1349 = vmatpush1.msra.mxu1 %v3692_v60 }
 0x458   :  { %1279 = vmatprep.subr.mxu0 %v3046_v35  ;;  %1350 = vmatprep.subr.mxu1 %v3049_v30 }
 0x459   :  { %1280 = vmatpush1.msra.mxu0 %v3052_v10  ;;  %1351 = vmatpush1.msra.mxu1 %v3055_v52 }
 0x45a   :  { %1281 = vmatprep.subr.mxu0 %v3058_v1  ;;  %1352 = vmatprep.subr.mxu1 %v3061_v43 }
 0x45b   :  { %1282 = vmatpush1.msra.mxu0 %v3143_v61  ;;  %1353 = vmatpush1.msra.mxu1 %v3146_v62 }
 0x45c   :  { %1283 = vmatprep.subr.mxu0 %v3149_v2  ;;  %1354 = vmatprep.subr.mxu1 %v3152_v58 }
 0x45d   :  { %1284 = vmatpush1.msra.mxu0 %v3155_v34  ;;  %1355 = vmatpush1.msra.mxu1 %v3158_v11 }
 0x45e   :  { %1285 = vmatprep.subr.mxu0 %v3161_v12  ;;  %1356 = vmatprep.subr.mxu1 %v3164_v13 }
 0x45f   :  { %1286 = vmatpush1.msra.mxu0 %v3167_v14  ;;  %1357 = vmatpush1.msra.mxu1 %v3170_v15 }
 0x460   :  { %1287 = vmatprep.subr.mxu0 %v3173_v16  ;;  %1358 = vmatprep.subr.mxu1 %v3176_v17 }
 0x461   :  { %1288 = vmatpush1.msra.mxu0 %v3179_v18  ;;  %1359 = vmatpush1.msra.mxu1 %v3182_v19 }
 0x462   :  { %1289 = vmatprep.subr.mxu0 %v3185_v20  ;;  %1360 = vmatprep.subr.mxu1 %v3188_v21 }
 0x463   :  { %1290 = vmatpush1.msra.mxu0 %v3191_v22  ;;  %1361 = vmatpush1.msra.mxu1 %v3194_v23 }
 0x464   :  { %1291 = vmatprep.subr.mxu0 %v3197_v24  ;;  %1362 = vmatprep.subr.mxu1 %v3200_v25 }
 0x465   :  { %1292 = vmatpush1.msra.mxu0 %v3203_v26  ;;  %1363 = vmatpush1.msra.mxu1 %v3206_v27 }
 0x466   :  { %1293 = vmatprep.subr.mxu0 %v3209_v28  ;;  %1364 = vmatprep.subr.mxu1 %v3212_v46  ;;  %v3714_v46 = vld [vmem:[#allocation51_spill] sm:$0xff]  ;;  %v3715_v28 = vld [vmem:[#allocation49_spill] sm:$0xff] }
 0x467   :  { %1294 = vmatpush1.msra.mxu0 %v3215_v37  ;;  %1365 = vmatpush1.msra.mxu1 %v3218_v38 }
 0x468   :  { %1295 = vmatprep.subr.mxu0 %v3221_v39  ;;  %1366 = vmatprep.subr.mxu1 %v3224_v41  ;;  %v3713_v41 = vld [vmem:[#allocation50_spill] sm:$0xff] }
 0x469   :  { %1296 = vmatpush1.msra.mxu0 %v3227_v42  ;;  %1367 = vmatpush1.msra.mxu1 %v3230_v44  ;;  %v3248_v44 = vld [vmem:[#allocation5 + $0x118] sm:$0xff] }
 0x46a   :  { %1297 = vmatprep.subr.mxu0 %v3233_v45  ;;  %1368 = vmatprep.subr.mxu1 %v3236_v49  ;;  %3709 = vst [vmem:[#allocation32_spill] sm:$0xff] %v3248_v44  ;;  %v3251_v45 = vld [vmem:[#allocation5 + $0x100] sm:$0xff]  ;;  %v3255_v49 = vld [vmem:[#allocation5 + $0x110] sm:$0xff] }
 0x46b   :  { %1298 = vmatpush1.msra.mxu0 %v3239_v50  ;;  %1369 = vmatpush1.msra.mxu1 %v3242_v51  ;;  %3710 = vst [vmem:[#allocation33_spill] sm:$0xff] %v3251_v45  ;;  %3711 = vst [vmem:[#allocation34_spill] sm:$0xff] %v3255_v49  ;;  %v3712_v51 = vld [vmem:[#allocation48_spill] sm:$0xff] }
 0x46c   :  { %1299 = vmatprep.subr.mxu0 %v3245_v53  ;;  %1370 = vmatprep.subr.mxu1 %v3248_v44 }
 0x46d   :  { %1300 = vmatpush1.msra.mxu0 %v3251_v45  ;;  %1333 = vmatprep.mubr.f32.mxu0 %v3672_v63 }
 0x46e   :  { %1371 = vmatpush1.msra.mxu1 %v3255_v49  ;;  %1404 = vmatprep.mubr.f32.mxu1 %v3672_v63 }
 0x46f   :  { %1436 = vmatprep.subr.mxu0 %v2972_v3  ;;  %1507 = vmatprep.subr.mxu1 %v2975_v5 }
 0x50e   :  { %v1168_v53 = vpop.f32.mrf.mxu0  ;;  %v1239_v45 = vpop.f32.mrf.mxu1 }
 0x50f   :  { %v1169_v50 = vadd.f32 %v1168_v53, %v3712_v51  ;;  %v1240_v63 = vadd.f32 %v1239_v45, %v3715_v28  ;;  %v3720_v45 = vld [vmem:[#allocation21_spill] sm:$0xff] }
 0x510   :  { %v1170_v44 = vpop.f32.mrf.mxu0  ;;  %v1241_v37 = vpop.f32.mrf.mxu1 }
 0x511   :  { %v1996_v42 = vmul.f32 -1.442695, %v1169_v50  ;;  %v1171_v39 = vadd.f32 %v1170_v44, %v3713_v41  ;;  %v1242_v49 = vadd.f32 %v1241_v37, %v3714_v46  ;;  %v3719_v37 = vld [vmem:[#allocation20_spill] sm:$0xff] }
 0x513   :  { %2164 = vpow2.f32 %v1996_v42  ;;  %v1997_v38 = vmul.f32 -1.442695, %v1171_v39  ;;  %v1998_v27 = vmul.f32 -1.442695, %v1242_v49  ;;  %v3721_v49 = vld [vmem:[#allocation22_spill] sm:$0xff] }
 0x515   :  { %2166 = vpow2.f32 %v1997_v38 }
 0x516   :  { %2168 = vtanh.f32 %v1240_v63 }
 0x517   :  { %2170 = vpow2.f32 %v1998_v27  ;;  %v3718_v27 = vld [vmem:[#allocation19_spill] sm:$0xff] }
 0x520   :  { %v2165_v3 = vpop.eup %2164 }
 0x521   :  { %v1247_v26 = vadd.f32 1.0, %v2165_v3 }
 0x522   :  { %v2167_v5 = vpop.eup %2166 }
 0x523   :  { %2172 = vrcp.f32 %v1247_v26  ;;  %v1253_v51 = vadd.f32 1.0, %v2167_v5  ;;  %v2169_v50 = vpop.eup %2168  ;;  %v3717_v26 = vld [vmem:[#allocation18_spill] sm:$0xff]  ;;  %v3732_v5 = vld [vmem:[#allocation33_spill] sm:$0xff] }
 0x524   :  { %v2171_v41 = vpop.eup %2170 }
 0x525   :  { %2174 = vrcp.f32 %v1253_v51  ;;  %v1260_v38 = vadd.f32 1.0, %v2171_v41  ;;  %v3722_v51 = vld [vmem:[#allocation23_spill] sm:$0xff]  ;;  %v3724_v41 = vld [vmem:[#allocation25_spill] sm:$0xff] }
 0x527   :  { %2176 = vrcp.f32 %v1260_v38  ;;  %v3728_v38 = vld [vmem:[#allocation29_spill] sm:$0xff] }
 0x530   :  { %v2173_v42 = vpop.eup %2172 }
 0x531   :  { %v1264_v44 = vmul.f32 %v2173_v42, %v2169_v50  ;;  %v3723_v50 = vld [vmem:[#allocation24_spill] sm:$0xff]  ;;  %v3725_v42 = vld [vmem:[#allocation26_spill] sm:$0xff] }
 0x532   :  { %v2175_v39 = vpop.eup %2174 }
 0x533   :  { %v1263_v53 = vmul.f32 %v2175_v39, %v3111_v48  ;;  %v3716_v48 = vld [vmem:[#allocation37_spill] sm:$0xff]  ;;  %v3727_v39 = vld [vmem:[#allocation28_spill] sm:$0xff] }
 0x534   :  { %v2177_v3 = vpop.eup %2176 }
 0x535   :  { %v3266_v46 = vadd.f32 %v1264_v44, %v1263_v53  ;;  %v3726_v44 = vld [vmem:[#allocation27_spill] sm:$0xff]  ;;  %v3729_v53 = vld [vmem:[#allocation30_spill] sm:$0xff] }
 0x537   :  { %2178 = vtanh.f32 %v3266_v46 }
 0x544   :  { %v2179_v63 = vpop.eup %2178 }
 0x545   :  { %v3269_v28 = vmul.f32 %v2179_v63, %v2177_v3  ;;  %v3730_v3 = vld [vmem:[#allocation31_spill] sm:$0xff]  ;;  %v3731_v63 = vld [vmem:[#allocation32_spill] sm:$0xff] }
 0x547   :  { %1334 = vmatmul.mubr.f32.vlgmr.msra.gmra.mxu0 %v3269_v28  ;;  %1405 = vmatmul.mubr.f32.vlgmr.msra.gmra.mxu1 %v3269_v28 }
 0x548   :  { %1437 = vmatpush1.msra.mxu0 %v2992_v59  ;;  %1508 = vmatpush1.msra.mxu1 %v2995_v36 }
 0x549   :  { %1438 = vmatprep.subr.mxu0 %v2998_v33  ;;  %1509 = vmatprep.subr.mxu1 %v3001_v4 }
 0x54a   :  { %1439 = vmatpush1.msra.mxu0 %v3004_v32  ;;  %1510 = vmatpush1.msra.mxu1 %v3007_v55 }
 0x54b   :  { %1440 = vmatprep.subr.mxu0 %v3010_v47  ;;  %1511 = vmatprep.subr.mxu1 %v3013_v31 }
 0x54c   :  { %1441 = vmatpush1.msra.mxu0 %v3016_v29  ;;  %1512 = vmatpush1.msra.mxu1 %v3019_v7 }
 0x54d   :  { %1442 = vmatprep.subr.mxu0 %v3022_v0  ;;  %1513 = vmatprep.subr.mxu1 %v3025_v8 }
 0x54e   :  { %1443 = vmatpush1.msra.mxu0 %v3028_v6  ;;  %1514 = vmatpush1.msra.mxu1 %v3031_v9 }
 0x54f   :  { %1444 = vmatprep.subr.mxu0 %v3689_v40  ;;  %1515 = vmatprep.subr.mxu1 %v3690_v56 }
 0x550   :  { %1445 = vmatpush1.msra.mxu0 %v3691_v57  ;;  %1516 = vmatpush1.msra.mxu1 %v3692_v60 }
 0x551   :  { %1446 = vmatprep.subr.mxu0 %v3046_v35  ;;  %1517 = vmatprep.subr.mxu1 %v3049_v30 }
 0x552   :  { %1447 = vmatpush1.msra.mxu0 %v3052_v10  ;;  %1518 = vmatpush1.msra.mxu1 %v3055_v52 }
 0x553   :  { %1448 = vmatprep.subr.mxu0 %v3058_v1  ;;  %1519 = vmatprep.subr.mxu1 %v3061_v43 }
 0x554   :  { %1449 = vmatpush1.msra.mxu0 %v3143_v61  ;;  %1520 = vmatpush1.msra.mxu1 %v3146_v62 }
 0x555   :  { %1450 = vmatprep.subr.mxu0 %v3149_v2  ;;  %1521 = vmatprep.subr.mxu1 %v3152_v58 }
 0x556   :  { %1451 = vmatpush1.msra.mxu0 %v3155_v34  ;;  %1522 = vmatpush1.msra.mxu1 %v3158_v11 }
 0x557   :  { %1452 = vmatprep.subr.mxu0 %v3161_v12  ;;  %1523 = vmatprep.subr.mxu1 %v3164_v13 }
 0x558   :  { %1453 = vmatpush1.msra.mxu0 %v3167_v14  ;;  %1524 = vmatpush1.msra.mxu1 %v3170_v15 }
 0x559   :  { %1454 = vmatprep.subr.mxu0 %v3173_v16  ;;  %1525 = vmatprep.subr.mxu1 %v3176_v17 }
 0x55a   :  { %1455 = vmatpush1.msra.mxu0 %v3179_v18  ;;  %1526 = vmatpush1.msra.mxu1 %v3182_v19 }
 0x55b   :  { %1456 = vmatprep.subr.mxu0 %v3185_v20  ;;  %1527 = vmatprep.subr.mxu1 %v3188_v21 }
 0x55c   :  { %1457 = vmatpush1.msra.mxu0 %v3191_v22  ;;  %1528 = vmatpush1.msra.mxu1 %v3194_v23 }
 0x55d   :  { %1458 = vmatprep.subr.mxu0 %v3197_v24  ;;  %1529 = vmatprep.subr.mxu1 %v3200_v25 }
 0x55e   :  { %1459 = vmatpush1.msra.mxu0 %v3716_v48  ;;  %1530 = vmatpush1.msra.mxu1 %v3717_v26  ;;  %v3740_v26 = vld [vmem:[#allocation53_spill] sm:$0xff] }
 0x55f   :  { %1460 = vmatprep.subr.mxu0 %v3718_v27  ;;  %1531 = vmatprep.subr.mxu1 %v3719_v37  ;;  %v3739_v27 = vld [vmem:[#allocation55_spill] sm:$0xff] }
 0x560   :  { %1461 = vmatpush1.msra.mxu0 %v3720_v45  ;;  %1532 = vmatpush1.msra.mxu1 %v3721_v49 }
 0x561   :  { %1462 = vmatprep.subr.mxu0 %v3722_v51  ;;  %1533 = vmatprep.subr.mxu1 %v3723_v50  ;;  %v3733_v51 = vmov 0.0   ;;  %v3734_v50 = vld [vmem:[#allocation34_spill] sm:$0xff] }
 0x562   :  { %1463 = vmatpush1.msra.mxu0 %v3724_v41  ;;  %1534 = vmatpush1.msra.mxu1 %v3725_v42  ;;  %v3735_v42 = vld [vmem:[#allocation16_spill] sm:$0xff] }
 0x563   :  { %1464 = vmatprep.subr.mxu0 %v3726_v44  ;;  %1535 = vmatprep.subr.mxu1 %v3727_v39  ;;  %v3736_v44 = vld [vmem:[#allocation17_spill] sm:$0xff] }
 0x564   :  { %1465 = vmatpush1.msra.mxu0 %v3728_v38  ;;  %1536 = vmatpush1.msra.mxu1 %v3729_v53  ;;  %v3737_v38 = vld [vmem:[#allocation52_spill] sm:$0xff] }
 0x565   :  { %1466 = vmatprep.subr.mxu0 %v3730_v3  ;;  %1537 = vmatprep.subr.mxu1 %v3731_v63  ;;  %v3738_v3 = vld [vmem:[#allocation54_spill] sm:$0xff] }
 0x566   :  { %1467 = vmatpush1.msra.mxu0 %v3732_v5  ;;  %1500 = vmatprep.mubr.f32.mxu0 %v3733_v51 }
 0x567   :  { %1538 = vmatpush1.msra.mxu1 %v3734_v50  ;;  %1571 = vmatprep.mubr.f32.mxu1 %v3733_v51 }
 0x568   :  { %1603 = vmatprep.subr.mxu0 %v3735_v42  ;;  %1674 = vmatprep.subr.mxu1 %v3736_v44 }
 0x607   :  { %v1335_v39 = vpop.f32.mrf.mxu0  ;;  %v1406_v63 = vpop.f32.mrf.mxu1 }
 0x608   :  { %v1336_v41 = vadd.f32 %v1335_v39, %v3737_v38  ;;  %v1407_v51 = vadd.f32 %v1406_v63, %v3740_v26 }
 0x609   :  { %v1337_v53 = vpop.f32.mrf.mxu0  ;;  %v1408_v37 = vpop.f32.mrf.mxu1 }
 0x60a   :  { %v1999_v49 = vmul.f32 -1.442695, %v1336_v41  ;;  %v1338_v45 = vadd.f32 %v1337_v53, %v3738_v3  ;;  %v1409_v50 = vadd.f32 %v1408_v37, %v3739_v27 }
 0x60c   :  { %2180 = vpow2.f32 %v1999_v49  ;;  %v2000_v5 = vmul.f32 -1.442695, %v1338_v45  ;;  %v2001_v48 = vmul.f32 -1.442695, %v1409_v50 }
 0x60e   :  { %2182 = vpow2.f32 %v2000_v5 }
 0x60f   :  { %2184 = vtanh.f32 %v1407_v51 }
 0x610   :  { %2186 = vpow2.f32 %v2001_v48 }
 0x619   :  { %v2181_v42 = vpop.eup %2180 }
 0x61a   :  { %v1414_v25 = vadd.f32 1.0, %v2181_v42 }
 0x61b   :  { %v2183_v44 = vpop.eup %2182 }
 0x61c   :  { %2188 = vrcp.f32 %v1414_v25  ;;  %v1420_v39 = vadd.f32 1.0, %v2183_v44  ;;  %v2185_v41 = vpop.eup %2184  ;;  %v3741_v25 = vmax.f32 %v3117_v54, %v3269_v28 }
 0x61d   :  { %v2187_v38 = vpop.eup %2186 }
 0x61e   :  { %2190 = vrcp.f32 %v1420_v39  ;;  %v1427_v5 = vadd.f32 1.0, %v2187_v38  ;;  %v1800_v38 = vld [vmem:[#allocation7 + $0xb0] sm:$0xff] }
 0x620   :  { %2192 = vrcp.f32 %v1427_v5  ;;  %v1796_v5 = vld [vmem:[#allocation7 + $0x90] sm:$0xff] }
 0x629   :  { %v2189_v49 = vpop.eup %2188 }
 0x62a   :  { %v1431_v53 = vmul.f32 %v2189_v49, %v2185_v41  ;;  %v1801_v41 = vld [vmem:[#allocation7 + $0xb8] sm:$0xff]  ;;  %v1799_v49 = vld [vmem:[#allocation7 + $0xa8] sm:$0xff] }
 0x62b   :  { %v2191_v45 = vpop.eup %2190 }
 0x62c   :  { %v1430_v3 = vmul.f32 %v2191_v45, %v3266_v46  ;;  %v1797_v45 = vld [vmem:[#allocation7 + $0x98] sm:$0xff] }
 0x62d   :  { %v2193_v26 = vpop.eup %2192 }
 0x62e   :  { %v3346_v27 = vadd.f32 %v1431_v53, %v1430_v3  ;;  %v1798_v53 = vld [vmem:[#allocation7 + $0xa0] sm:$0xff]  ;;  %v1795_v3 = vld [vmem:[#allocation7 + $0x88] sm:$0xff] }
 0x630   :  { %2194 = vtanh.f32 %v3346_v27 }
 0x63d   :  { %v2195_v37 = vpop.eup %2194 }
 0x63e   :  { %v1434_v51 = vmul.f32 %v2195_v37, %v2193_v26  ;;  %v1785_v26 = vld [vmem:[#allocation7 + $0x38] sm:$0xff] }
 0x63f   :  { %v1793_v37 = vld [vmem:[#allocation7 + $0x78] sm:$0xff] }
 0x640   :  { %1501 = vmatmul.mubr.f32.vlgmr.msra.gmra.mxu0 %v1434_v51  ;;  %1572 = vmatmul.mubr.f32.vlgmr.msra.gmra.mxu1 %v1434_v51  ;;  %v3352_v48 = vmax.f32 %v3741_v25, %v1434_v51  ;;  %v1784_v51 = vld [vmem:[#allocation7 + $0x30] sm:$0xff]  ;;  %v1783_v25 = vld [vmem:[#allocation7 + $0x28] sm:$0xff] }
 0x641   :  { %1604 = vmatpush1.msra.mxu0 %v2992_v59  ;;  %1675 = vmatpush1.msra.mxu1 %v2995_v36  ;;  %v3743_v59 = vld [vmem:[#allocation37_spill] sm:$0xff]  ;;  %v3744_v36 = vld [vmem:[#allocation18_spill] sm:$0xff] }
 0x642   :  { %1605 = vmatprep.subr.mxu0 %v2998_v33  ;;  %1676 = vmatprep.subr.mxu1 %v3001_v4  ;;  %v3745_v33 = vld [vmem:[#allocation19_spill] sm:$0xff]  ;;  %v3746_v4 = vld [vmem:[#allocation20_spill] sm:$0xff] }
 0x643   :  { %1606 = vmatpush1.msra.mxu0 %v3004_v32  ;;  %1677 = vmatpush1.msra.mxu1 %v3007_v55  ;;  %v3747_v32 = vld [vmem:[#allocation21_spill] sm:$0xff]  ;;  %v3748_v55 = vld [vmem:[#allocation22_spill] sm:$0xff] }
 0x644   :  { %1607 = vmatprep.subr.mxu0 %v3010_v47  ;;  %1678 = vmatprep.subr.mxu1 %v3013_v31  ;;  %v3749_v47 = vld [vmem:[#allocation23_spill] sm:$0xff]  ;;  %v3750_v31 = vld [vmem:[#allocation24_spill] sm:$0xff] }
 0x645   :  { %1608 = vmatpush1.msra.mxu0 %v3016_v29  ;;  %1679 = vmatpush1.msra.mxu1 %v3019_v7  ;;  %v3751_v29 = vld [vmem:[#allocation25_spill] sm:$0xff]  ;;  %v3752_v7 = vld [vmem:[#allocation26_spill] sm:$0xff] }
 0x646   :  { %1609 = vmatprep.subr.mxu0 %v3022_v0  ;;  %1680 = vmatprep.subr.mxu1 %v3025_v8  ;;  %v3753_v0 = vld [vmem:[#allocation27_spill] sm:$0xff]  ;;  %v3754_v8 = vld [vmem:[#allocation28_spill] sm:$0xff] }
 0x647   :  { %1610 = vmatpush1.msra.mxu0 %v3028_v6  ;;  %1681 = vmatpush1.msra.mxu1 %v3031_v9  ;;  %v3755_v6 = vld [vmem:[#allocation29_spill] sm:$0xff]  ;;  %v3756_v9 = vld [vmem:[#allocation30_spill] sm:$0xff] }
 0x648   :  { %1611 = vmatprep.subr.mxu0 %v3689_v40  ;;  %1682 = vmatprep.subr.mxu1 %v3690_v56  ;;  %v3762_v40 = vld [vmem:[#allocation56_spill] sm:$0xff] }
 0x649   :  { %1612 = vmatpush1.msra.mxu0 %v3691_v57  ;;  %1683 = vmatpush1.msra.mxu1 %v3692_v60 }
 0x64a   :  { %1613 = vmatprep.subr.mxu0 %v3046_v35  ;;  %1684 = vmatprep.subr.mxu1 %v3049_v30  ;;  %v3742_v30 = vld [vmem:[#allocation39_spill] sm:$0xff]  ;;  %v3761_v35 = vld [vmem:[#allocation34_spill] sm:$0xff] }
 0x64b   :  { %1614 = vmatpush1.msra.mxu0 %v3052_v10  ;;  %1685 = vmatpush1.msra.mxu1 %v3055_v52  ;;  %v3757_v10 = vld [vmem:[#allocation31_spill] sm:$0xff]  ;;  %v3758_v52 = vld [vmem:[#allocation32_spill] sm:$0xff] }
 0x64c   :  { %1615 = vmatprep.subr.mxu0 %v3058_v1  ;;  %1686 = vmatprep.subr.mxu1 %v3061_v43  ;;  %v3759_v1 = vld [vmem:[#allocation33_spill] sm:$0xff]  ;;  %v3760_v43 = vmov 0.0  }
 0x64d   :  { %1616 = vmatpush1.msra.mxu0 %v3143_v61  ;;  %1687 = vmatpush1.msra.mxu1 %v3146_v62  ;;  %v3763_v61 = vld [vmem:[#allocation58_spill] sm:$0xff] }
 0x64e   :  { %1617 = vmatprep.subr.mxu0 %v3149_v2  ;;  %1688 = vmatprep.subr.mxu1 %v3152_v58 }
 0x64f   :  { %1618 = vmatpush1.msra.mxu0 %v3155_v34  ;;  %1689 = vmatpush1.msra.mxu1 %v3158_v11  ;;  %v3764_v11 = vld [vmem:[#allocation59_spill] sm:$0xff] }
 0x650   :  { %1619 = vmatprep.subr.mxu0 %v3161_v12  ;;  %1690 = vmatprep.subr.mxu1 %v3164_v13  ;;  %v3765_v13 = vld [vmem:[#allocation57_spill] sm:$0xff] }
 0x651   :  { %1620 = vmatpush1.msra.mxu0 %v3167_v14  ;;  %1691 = vmatpush1.msra.mxu1 %v3170_v15 }
 0x652   :  { %1621 = vmatprep.subr.mxu0 %v3173_v16  ;;  %1692 = vmatprep.subr.mxu1 %v3176_v17 }
 0x653   :  { %1622 = vmatpush1.msra.mxu0 %v3179_v18  ;;  %1693 = vmatpush1.msra.mxu1 %v3182_v19 }
 0x654   :  { %1623 = vmatprep.subr.mxu0 %v3185_v20  ;;  %1694 = vmatprep.subr.mxu1 %v3188_v21 }
 0x655   :  { %1624 = vmatpush1.msra.mxu0 %v3191_v22  ;;  %1695 = vmatpush1.msra.mxu1 %v3194_v23 }
 0x656   :  { %1625 = vmatprep.subr.mxu0 %v3197_v24  ;;  %1696 = vmatprep.subr.mxu1 %v3742_v30  ;;  %v1792_v30 = vld [vmem:[#allocation7 + $0x70] sm:$0xff] }
 0x657   :  { %1626 = vmatpush1.msra.mxu0 %v3743_v59  ;;  %1697 = vmatpush1.msra.mxu1 %v3744_v36  ;;  %v1782_v59 = vld [vmem:[#allocation7 + $0x20] sm:$0xff]  ;;  %v1791_v36 = vld [vmem:[#allocation7 + $0x68] sm:$0xff] }
 0x658   :  { %1627 = vmatprep.subr.mxu0 %v3745_v33  ;;  %1698 = vmatprep.subr.mxu1 %v3746_v4  ;;  %v1781_v33 = vld [vmem:[#allocation7 + $0x18] sm:$0xff]  ;;  %v1790_v4 = vld [vmem:[#allocation7 + $0x60] sm:$0xff] }
 0x659   :  { %1628 = vmatpush1.msra.mxu0 %v3747_v32  ;;  %1699 = vmatpush1.msra.mxu1 %v3748_v55  ;;  %v1780_v32 = vld [vmem:[#allocation7 + $0x10] sm:$0xff]  ;;  %v1789_v55 = vld [vmem:[#allocation7 + $0x58] sm:$0xff] }
 0x65a   :  { %1629 = vmatprep.subr.mxu0 %v3749_v47  ;;  %1700 = vmatprep.subr.mxu1 %v3750_v31  ;;  %v1779_v47 = vld [vmem:[#allocation7 + $0x8] sm:$0xff]  ;;  %v1788_v31 = vld [vmem:[#allocation7 + $0x50] sm:$0xff] }
 0x65b   :  { %1630 = vmatpush1.msra.mxu0 %v3751_v29  ;;  %1701 = vmatpush1.msra.mxu1 %v3752_v7  ;;  %v1778_v29 = vld [vmem:[#allocation7] sm:$0xff]  ;;  %v1787_v7 = vld [vmem:[#allocation7 + $0x48] sm:$0xff] }
 0x65c   :  { %1631 = vmatprep.subr.mxu0 %v3753_v0  ;;  %1702 = vmatprep.subr.mxu1 %v3754_v8  ;;  %v3766_v0 = vld [vmem:[#allocation14_spill] sm:$0xff]  ;;  %v3767_v8 = vld [vmem:[#allocation15_spill] sm:$0xff] }
 0x65d   :  { %1632 = vmatpush1.msra.mxu0 %v3755_v6  ;;  %1703 = vmatpush1.msra.mxu1 %v3756_v9  ;;  %v3768_v6 = vmax.f32 %v3766_v0, %v3767_v8 }
 0x65e   :  { %1633 = vmatprep.subr.mxu0 %v3757_v10  ;;  %1704 = vmatprep.subr.mxu1 %v3758_v52  ;;  %v1786_v10 = vld [vmem:[#allocation7 + $0x40] sm:$0xff] }
 0x65f   :  { %1634 = vmatpush1.msra.mxu0 %v3759_v1  ;;  %1667 = vmatprep.mubr.f32.mxu0 %v3760_v43  ;;  %v1777_v9 = vmax.f32 %v3768_v6, 0.0  ;;  %v3769_v1 = vld [vmem:[#allocation60_spill] sm:$0xff] }
 0x660   :  { %1705 = vmatpush1.msra.mxu1 %v3761_v35  ;;  %1738 = vmatprep.mubr.f32.mxu1 %v3760_v43 }
 0x661   :  { %2036 = vmatprep.subr.mxu0 %v3760_v43  ;;  %2071 = vmatprep.subr.mxu1 %v3760_v43 }
 0x700   :  { %v1502_v54 = vpop.f32.mrf.mxu0  ;;  %v1573_v2 = vpop.f32.mrf.mxu1 }
 0x701   :  { %v1503_v56 = vadd.f32 %v1502_v54, %v3762_v40  ;;  %v1574_v14 = vadd.f32 %v1573_v2, %v3765_v13  ;;  %v3771_v2 = vld [vmem:[#allocation63_spill] sm:$0xff] }
 0x702   :  { %v1504_v57 = vpop.f32.mrf.mxu0  ;;  %v1575_v34 = vpop.f32.mrf.mxu1 }
 0x703   :  { %v2002_v60 = vmul.f32 -1.442695, %v1503_v56  ;;  %v1505_v62 = vadd.f32 %v1504_v57, %v3763_v61  ;;  %v1576_v12 = vadd.f32 %v1575_v34, %v3764_v11  ;;  %v3770_v56 = vld [vmem:[#allocation62_spill] sm:$0xff]  ;;  %v3772_v34 = vld [vmem:[#allocation61_spill] sm:$0xff] }
 0x705   :  { %2196 = vpow2.f32 %v2002_v60  ;;  %v2003_v58 = vmul.f32 -1.442695, %v1505_v62  ;;  %v2004_v15 = vmul.f32 -1.442695, %v1576_v12 }
 0x707   :  { %2198 = vpow2.f32 %v2003_v58 }
 0x708   :  { %2200 = vtanh.f32 %v1574_v14 }
 0x709   :  { %2202 = vpow2.f32 %v2004_v15 }
 0x712   :  { %v2197_v16 = vpop.eup %2196 }
 0x713   :  { %v1581_v17 = vadd.f32 1.0, %v2197_v16 }
 0x714   :  { %v2199_v18 = vpop.eup %2198 }
 0x715   :  { %2204 = vrcp.f32 %v1581_v17  ;;  %v1587_v19 = vadd.f32 1.0, %v2199_v18  ;;  %v2201_v20 = vpop.eup %2200 }
 0x716   :  { %v2203_v21 = vpop.eup %2202 }
 0x717   :  { %2206 = vrcp.f32 %v1587_v19  ;;  %v1594_v46 = vadd.f32 1.0, %v2203_v21 }
 0x719   :  { %2208 = vrcp.f32 %v1594_v46 }
 0x722   :  { %v2205_v22 = vpop.eup %2204 }
 0x723   :  { %v1598_v23 = vmul.f32 %v2205_v22, %v2201_v20 }
 0x724   :  { %v2207_v24 = vpop.eup %2206 }
 0x725   :  { %v1597_v28 = vmul.f32 %v2207_v24, %v3346_v27  ;;  %v1794_v27 = vld [vmem:[#allocation7 + $0x80] sm:$0xff] }
 0x726   :  { %v2209_v63 = vpop.eup %2208 }
 0x727   :  { %v3425_v50 = vadd.f32 %v1598_v23, %v1597_v28 }
 0x729   :  { %2210 = vtanh.f32 %v3425_v50 }
 0x736   :  { %v2211_v42 = vpop.eup %2210 }
 0x737   :  { %v3428_v44 = vmul.f32 %v2211_v42, %v2209_v63 }
 0x739   :  { %1668 = vmatmul.mubr.f32.vlgmr.msra.gmra.mxu0 %v3428_v44  ;;  %1739 = vmatmul.mubr.f32.vlgmr.msra.gmra.mxu1 %v3428_v44  ;;  %v1602_v39 = vmax.f32 %v3352_v48, %v3428_v44 }
 0x73a   :  { %2037 = vmatpush3.msra.mxu0 %v1801_v41  ;;  %2072 = vmatpush3.msra.mxu1 %v1785_v26 }
 0x73b   :  { %2038 = vmatprep.subr.mxu0 %v3760_v43  ;;  %2073 = vmatprep.subr.mxu1 %v3760_v43 }
 0x73c   :  { %2039 = vmatpush3.msra.mxu0 %v1800_v38  ;;  %2074 = vmatpush3.msra.mxu1 %v1784_v51  ;;  %v2009_v38 = vld [vmem:[#allocation7 + $0xc0] ss:$0 sm:$0xff] }
 0x73d   :  { %2040 = vmatprep.subr.mxu0 %v3760_v43  ;;  %2075 = vmatprep.subr.mxu1 %v3760_v43 }
 0x73e   :  { %2041 = vmatpush3.msra.mxu0 %v1799_v49  ;;  %2076 = vmatpush3.msra.mxu1 %v1783_v25 }
 0x73f   :  { %2042 = vmatprep.subr.mxu0 %v3760_v43  ;;  %2077 = vmatprep.subr.mxu1 %v3760_v43 }
 0x740   :  { %2043 = vmatpush3.msra.mxu0 %v1798_v53  ;;  %2078 = vmatpush3.msra.mxu1 %v1782_v59 }
 0x741   :  { %2044 = vmatprep.subr.mxu0 %v3760_v43  ;;  %2079 = vmatprep.subr.mxu1 %v3760_v43 }
 0x742   :  { %2045 = vmatpush3.msra.mxu0 %v1797_v45  ;;  %2080 = vmatpush3.msra.mxu1 %v1781_v33 }
 0x743   :  { %2046 = vmatprep.subr.mxu0 %v3760_v43  ;;  %2081 = vmatprep.subr.mxu1 %v3760_v43 }
 0x744   :  { %2047 = vmatpush3.msra.mxu0 %v1796_v5  ;;  %2082 = vmatpush3.msra.mxu1 %v1780_v32 }
 0x745   :  { %2048 = vmatprep.subr.mxu0 %v3760_v43  ;;  %2083 = vmatprep.subr.mxu1 %v3760_v43 }
 0x746   :  { %2049 = vmatpush3.msra.mxu0 %v1795_v3  ;;  %2084 = vmatpush3.msra.mxu1 %v1779_v47 }
 0x747   :  { %2050 = vmatprep.subr.mxu0 %v3760_v43  ;;  %2085 = vmatprep.subr.mxu1 %v3760_v43 }
 0x748   :  { %2051 = vmatpush3.msra.mxu0 %v1794_v27  ;;  %2086 = vmatpush3.msra.mxu1 %v1778_v29 }
 0x749   :  { %2052 = vmatprep.subr.mxu0 %v3760_v43  ;;  %2087 = vmatprep.mubr.msk.f32.mxu1 %vm2386_vm1, %v3760_v43 }
 0x74a   :  { %2053 = vmatpush3.msra.mxu0 %v1793_v37  ;;  %2068 = vmatprep.mubr.msk.f32.mxu0 %vm2386_vm1, %v3760_v43 }
 0x74b   :  { %2054 = vmatprep.subr.mxu0 %v3760_v43  ;;  %2088 = vmatmul.mubr.msk.f32.vlgmr.msra.gmra.mxu1 %vm183_vm0, %v1777_v9 }
 0x74c   :  { %2055 = vmatpush3.msra.mxu0 %v1792_v30 }
 0x74d   :  { %2056 = vmatprep.subr.mxu0 %v3760_v43 }
 0x74e   :  { %2057 = vmatpush3.msra.mxu0 %v1791_v36 }
 0x74f   :  { %2058 = vmatprep.subr.mxu0 %v3760_v43 }
 0x750   :  { %2059 = vmatpush3.msra.mxu0 %v1790_v4 }
 0x751   :  { %2060 = vmatprep.subr.mxu0 %v3760_v43 }
 0x752   :  { %2061 = vmatpush3.msra.mxu0 %v1789_v55 }
 0x753   :  { %2062 = vmatprep.subr.mxu0 %v3760_v43 }
 0x754   :  { %2063 = vmatpush3.msra.mxu0 %v1788_v31 }
 0x755   :  { %2064 = vmatprep.subr.mxu0 %v3760_v43 }
 0x756   :  { %2065 = vmatpush3.msra.mxu0 %v1787_v7 }
 0x757   :  { %2066 = vmatprep.subr.mxu0 %v3760_v43 }
 0x758   :  { %2067 = vmatpush3.msra.mxu0 %v1786_v10 }
 0x7f9   :  { %v1669_v52 = vpop.f32.mrf.mxu0  ;;  %v1740_v60 = vpop.f32.mrf.mxu1 }
 0x7fa   :  { %v1670_v35 = vadd.f32 %v1669_v52, %v3769_v1  ;;  %v1741_v11 = vadd.f32 %v1740_v60, %v3772_v34 }
 0x7fb   :  { %v1671_v54 = vpop.f32.mrf.mxu0  ;;  %v1742_v62 = vpop.f32.mrf.mxu1 }
 0x7fc   :  { %v2005_v40 = vmul.f32 -1.442695, %v1670_v35  ;;  %v1672_v57 = vadd.f32 %v1671_v54, %v3770_v56  ;;  %v1743_v58 = vadd.f32 %v1742_v62, %v3771_v2 }
 0x7fe   :  { %2212 = vpow2.f32 %v2005_v40  ;;  %v2006_v61 = vmul.f32 -1.442695, %v1672_v57  ;;  %v2007_v43 = vmul.f32 -1.442695, %v1743_v58 }
 0x800   :  { %2214 = vpow2.f32 %v2006_v61 }
 0x801   :  { %2216 = vtanh.f32 %v1741_v11 }
 0x802   :  { %2218 = vpow2.f32 %v2007_v43 }
 0x80b   :  { %v2213_v12 = vpop.eup %2212  ;;  %v1942_v42 = vpop.f32.mrf.mxu1 }
 0x80c   :  { %v1748_v13 = vadd.f32 1.0, %v2213_v12 }
 0x80d   :  { %v2215_v14 = vpop.eup %2214  ;;  %v2089_v41 = vpop.f32.mrf.mxu1 }
 0x80e   :  { %2220 = vrcp.f32 %v1748_v13  ;;  %v1754_v15 = vadd.f32 1.0, %v2215_v14  ;;  %v2217_v16 = vpop.eup %2216 }
 0x80f   :  { %v2219_v17 = vpop.eup %2218 }
 0x810   :  { %2222 = vrcp.f32 %v1754_v15  ;;  %v1761_v21 = vadd.f32 1.0, %v2219_v17 }
 0x812   :  { %2224 = vrcp.f32 %v1761_v21 }
 0x81b   :  { %v2221_v18 = vpop.eup %2220 }
 0x81c   :  { %v1765_v19 = vmul.f32 %v2221_v18, %v2217_v16 }
 0x81d   :  { %v2223_v20 = vpop.eup %2222 }
 0x81e   :  { %v1764_v22 = vmul.f32 %v2223_v20, %v3425_v50 }
 0x81f   :  { %v2225_v24 = vpop.eup %2224 }
 0x820   :  { %v1766_v23 = vadd.f32 %v1765_v19, %v1764_v22 }
 0x822   :  { %2226 = vtanh.f32 %v1766_v23 }
 0x82f   :  { %v2227_v46 = vpop.eup %2226 }
 0x830   :  { %v1768_v28 = vmul.f32 %v2227_v46, %v2225_v24 }
 0x832   :  { %v1769_v63 = vmax.f32 %v1602_v39, %v1768_v28 }
 0x834   :  { %2069 = vmatmul.mubr.f32.vlgmr.msra.gmra.mxu0 %v1769_v63 }
 0x8f4   :  { %v1869_v49 = vpop.f32.mrf.mxu0 }
 0x8f5   :  { %v1943_v53 = vadd.f32 %v1942_v42, %v1869_v49 }
 0x8f6   :  { %v2070_v45 = vpop.f32.mrf.mxu0 }
 0x8f7   :  { %v1950_v50 = vadd.f32 %v2009_v38, %v1943_v53 }
 0x8f9   :  { %1951 = vst [vmem:[#allocation8] sm:$0xff] %v1950_v50 }
 0x8fa   :  { %2363 = shalt.err (!%p2360_p5)
}
 0x8fb   :  { %1961 = dma.vmem_to_hbm [thread:$0]  %s1959_s2, 128, %s3476_s3, [#allocation4]  }
 0x8fc   :  { %2376 = dma.done.wait [#allocation4], 128  }
 0x8fd   :  { %2377 = vsyncadd [#allocation4], 4294967168 }
 0x8fe   :  { %1965 = vsyncpa [#allocation3], 1 }
 0x8ff   :  { %1966 = vsyncpa [#allocation6], 1 }
 0x900   :  { %1967 = vsyncpa [#allocation4], 1 }

</bundles_post_ra>
